<compile_context>
chip_gen: v7x
topology: tpu7x:2x2x1
jax: 0.10.0
libtpu: 0.0.40
codegen_flags: <defaults>
</compile_context>

<pallas_src>
import functools
import math
from dataclasses import dataclass

import jax
import jax.numpy as jnp
from jax.experimental import pallas as pl
from jax.experimental.pallas import tpu as pltpu


# ----------------------------- config ---------------------------------------

@dataclass(frozen=True)
class ViTConfig:
    image_size: int = 16
    patch_size: int = 8
    num_channels: int = 3
    hidden_size: int = 32
    num_layers: int = 2
    num_heads: int = 2
    intermediate_size: int = 64
    num_labels: int = 5
    layer_norm_eps: float = 1e-12


CFG = ViTConfig()
HEAD_PAD = 128          # lane-aligned block per (head, {Q,K,V}) section
CLS_PAD = 128           # lane-dense classifier output width


# ----------------------------- fused Pallas kernel ---------------------------

def _vit_fused_kernel(
    patches_ref, tok_add_ref, mask_ref, patch_w_ref, ln_vecs_ref,
    qkv_w_ref, qkv_b_ref, o_w_ref, i_w_ref, i_b_ref, out_w_ref,
    lnf_ref, cls_w_ref, cls_b_ref,
    logits_ref,
    *, num_heads, head_pad, eps, batch, seq):

    B, S, Hh, HP = batch, seq, num_heads, head_pad
    BS = B * S
    D = patch_w_ref.shape[1]
    L = qkv_w_ref.shape[0]

    def mm(a, b):
        # single-pass bf16 MXU matmul, f32 accumulation
        return jnp.dot(a.astype(jnp.bfloat16), b.astype(jnp.bfloat16),
                       preferred_element_type=jnp.float32)

    def mm_nt(a, b):
        # a (m, k) @ b (n, k)^T -> (m, n)
        return jnp.einsum("md,nd->mn",
                          a.astype(jnp.bfloat16), b.astype(jnp.bfloat16),
                          preferred_element_type=jnp.float32)

    def layer_norm(x, g, b):
        mean = jnp.mean(x, axis=-1, keepdims=True)
        xc = x - mean
        var = jnp.mean(xc * xc, axis=-1, keepdims=True)
        return xc * jax.lax.rsqrt(var + eps) * g + b

    def erf(x):
        # Abramowitz & Stegun 7.1.26 polynomial (|abs err| < 1.5e-7):
        # exact-erf GELU flavour using only exp / VPU ops.
        pc = 0.3275911
        a1, a2, a3, a4, a5 = (0.254829592, -0.284496736, 1.421413741,
                              -1.453152027, 1.061405429)
        ax = jnp.abs(x)
        t = 1.0 / (1.0 + pc * ax)
        poly = ((((a5 * t + a4) * t + a3) * t + a2) * t + a1) * t
        y = 1.0 - poly * jnp.exp(-ax * ax)
        return jnp.where(x >= 0.0, y, -y)

    def gelu(x):
        return 0.5 * x * (1.0 + erf(x * 0.7071067811865476))

    # block-diagonal additive mask (0 inside a batch block, -1e30 across
    # batches), precomputed host-side; applied BEFORE the softmax row max.
    mask = mask_ref[...]                                   # (BS, BS) f32

    # ---- patch embedding + token assembly (no in-kernel scatter) ----
    # CLS rows of `patches` are zero; tok_add carries cls_token+pos[0] there
    # and pos[1:]+patch_b on patch rows.
    h = mm(patches_ref[...], patch_w_ref[...]) + tok_add_ref[...]   # (BS, D) f32

    # ---- transformer encoder, statically unrolled ----
    for l in range(L):
        vecs = ln_vecs_ref[l]           # (6, D): ln1_g, ln1_b, o_b, ln2_g, ln2_b, out_b
        ln1_g, ln1_b = vecs[0:1, :], vecs[1:2, :]
        o_b = vecs[2:3, :]
        ln2_g, ln2_b = vecs[3:4, :], vecs[4:5, :]
        out_b = vecs[5:6, :]

        # --- attention: batched over B via the block-diagonal mask ---
        ln1 = layer_norm(h, ln1_g, ln1_b)
        # fused QKV projection; head-blocked 128-lane-aligned layout,
        # Q pre-scaled by 1/sqrt(head_dim) at param prep time.
        qkv = mm(ln1, qkv_w_ref[l]) + qkv_b_ref[l]          # (BS, Hh*3*HP)
        o_w_l = o_w_ref[l]                                  # (Hh*HP, D) bf16

        attn = jnp.zeros((BS, D), jnp.float32)
        for hd in range(Hh):
            base = hd * 3 * HP
            q_h = qkv[:, base:base + HP]                    # 128-lane aligned
            k_h = qkv[:, base + HP:base + 2 * HP]           # (zero-padded past Dh)
            v_h = qkv[:, base + 2 * HP:base + 3 * HP]
            s = mm_nt(q_h, k_h) + mask                      # (BS, BS)
            p = jnp.exp(s - jnp.max(s, axis=-1, keepdims=True))
            p = p * pl.reciprocal(jnp.sum(p, axis=-1, keepdims=True), approx=True)
            ctx = mm(p, v_h)                                # (BS, HP), cols>=Dh are 0
            # head merge fused into the (zero-row-padded) o_w block
            attn = attn + mm(ctx, o_w_l[hd * HP:(hd + 1) * HP, :])
        h = h + attn + o_b                                  # residual 1

        # --- MLP ---
        ln2 = layer_norm(h, ln2_g, ln2_b)
        inter = gelu(mm(ln2, i_w_ref[l]) + i_b_ref[l])
        h = h + mm(inter, out_w_ref[l]) + out_b             # residual 2

    # ---- final LayerNorm + classifier on the CLS rows only ----
    cls_rows = jnp.concatenate([h[b * S:b * S + 1, :] for b in range(B)], axis=0)
    lnf = lnf_ref[...]                                      # (2, D)
    cls_ln = layer_norm(cls_rows, lnf[0:1, :], lnf[1:2, :])
    logits_ref[...] = (mm(cls_ln, cls_w_ref[...]) + cls_b_ref[...]
                       ).astype(logits_ref.dtype)           # lane-dense (B, 128)


# ----------------------------- parameters ------------------------------------

def init_params(cfg: ViTConfig, seed: int = 0):
    keys = iter(jax.random.split(jax.random.PRNGKey(seed), 128))

    def nrm(shape, scale=0.02):
        return scale * jax.random.normal(next(keys), shape, dtype=jnp.float32)

    def zeros(shape):
        return jnp.zeros(shape, jnp.float32)

    def ones(shape):
        return jnp.ones(shape, jnp.float32)

    D, I = cfg.hidden_size, cfg.intermediate_size
    patch_dim = cfg.num_channels * cfg.patch_size * cfg.patch_size
    num_patches = (cfg.image_size // cfg.patch_size) ** 2

    # TODO(synk): ViTModel.from_pretrained checkpoint loading has no in-script
    # equivalent; weights are randomly initialized with the same structure.
    params = dict(
        patch_w=nrm((patch_dim, D)), patch_b=zeros((D,)),
        cls_token=nrm((1, 1, D)),
        pos_embed=nrm((1, num_patches + 1, D)),
        lnf_g=ones((D,)), lnf_b=zeros((D,)),
        cls_w=nrm((D, cfg.num_labels)), cls_b=zeros((cfg.num_labels,)),
        layers=[],
    )
    for _ in range(cfg.num_layers):
        params["layers"].append(dict(
            ln1_g=ones((D,)), ln1_b=zeros((D,)),
            q_w=nrm((D, D)), q_b=zeros((D,)),
            k_w=nrm((D, D)), k_b=zeros((D,)),
            v_w=nrm((D, D)), v_b=zeros((D,)),
            o_w=nrm((D, D)), o_b=zeros((D,)),
            ln2_g=ones((D,)), ln2_b=zeros((D,)),
            i_w=nrm((D, I)), i_b=zeros((I,)),
            out_w=nrm((I, D)), out_b=zeros((D,)),
        ))
    return params


def prepare_params(params, cfg: ViTConfig, batch_size: int):
    """One-time host-side transform:
       * stack per-layer vectors into one (L, 6, D) blob (fewer input DMAs),
       * build head-blocked 128-lane-aligned fused QKV (Q pre-scaled) and
         zero-row-padded per-head o_w blocks,
       * build the (B*S, D) token-add matrix and the (B*S, B*S) block-diag mask,
       * cast all matmul weights to bf16, pad the classifier to 128 lanes."""
    D = cfg.hidden_size
    Hh = cfg.num_heads
    Dh = D // Hh
    HP = HEAD_PAD
    L = cfg.num_layers
    Np = (cfg.image_size // cfg.patch_size) ** 2
    S = Np + 1
    B = batch_size
    scale = 1.0 / math.sqrt(Dh)
    layers = params["layers"]

    def bf(x):
        return x.astype(jnp.bfloat16)

    # token-add matrix: CLS rows get cls_token + pos[0]; patch rows get
    # pos[1 + p] + patch_b (the patch-embed bias is folded in here).
    tok_add_s = jnp.concatenate(
        [(params["cls_token"][0, 0] + params["pos_embed"][0, 0])[None, :],
         params["pos_embed"][0, 1:] + params["patch_b"][None, :]], axis=0)  # (S, D)
    tok_add = jnp.tile(tok_add_s, (B, 1))                                   # (B*S, D)

    # block-diagonal additive attention mask
    bid = jnp.arange(B * S) // S
    attn_mask = jnp.where(bid[:, None] == bid[None, :], 0.0, -1e30
                          ).astype(jnp.float32)                             # (B*S, B*S)

    # stacked per-layer vectors: [ln1_g, ln1_b, o_b, ln2_g, ln2_b, out_b]
    ln_vecs = jnp.stack([jnp.stack([lyr["ln1_g"], lyr["ln1_b"], lyr["o_b"],
                                    lyr["ln2_g"], lyr["ln2_b"], lyr["out_b"]])
                         for lyr in layers])                                # (L, 6, D)

    # head-blocked, 128-lane-aligned fused QKV + zero-row-padded o_w blocks
    qkv_w = jnp.zeros((L, D, Hh * 3 * HP), jnp.float32)
    qkv_b = jnp.zeros((L, 1, Hh * 3 * HP), jnp.float32)
    o_w = jnp.zeros((L, Hh * HP, D), jnp.float32)
    for l, lyr in enumerate(layers):
        for h in range(Hh):
            cols = slice(h * Dh, (h + 1) * Dh)
            base = h * 3 * HP
            qkv_w = qkv_w.at[l, :, base:base + Dh].set(lyr["q_w"][:, cols] * scale)
            qkv_w = qkv_w.at[l, :, base + HP:base + HP + Dh].set(lyr["k_w"][:, cols])
            qkv_w = qkv_w.at[l, :, base + 2 * HP:base + 2 * HP + Dh].set(lyr["v_w"][:, cols])
            qkv_b = qkv_b.at[l, 0, base:base + Dh].set(lyr["q_b"][cols] * scale)
            qkv_b = qkv_b.at[l, 0, base + HP:base + HP + Dh].set(lyr["k_b"][cols])
            qkv_b = qkv_b.at[l, 0, base + 2 * HP:base + 2 * HP + Dh].set(lyr["v_b"][cols])
            o_w = o_w.at[l, h * HP:h * HP + Dh, :].set(lyr["o_w"][cols, :])

    i_w = jnp.stack([lyr["i_w"] for lyr in layers])
    i_b = jnp.stack([lyr["i_b"][None, :] for lyr in layers])
    out_w = jnp.stack([lyr["out_w"] for lyr in layers])

    lnf = jnp.stack([params["lnf_g"], params["lnf_b"]])                     # (2, D)

    cls_w = jnp.zeros((D, CLS_PAD), jnp.float32
                      ).at[:, :cfg.num_labels].set(params["cls_w"])
    cls_b = jnp.zeros((1, CLS_PAD), jnp.float32
                      ).at[0, :cfg.num_labels].set(params["cls_b"])

    return dict(
        tok_add=tok_add, attn_mask=attn_mask,
        patch_w=bf(params["patch_w"]),
        ln_vecs=ln_vecs, qkv_w=bf(qkv_w), qkv_b=qkv_b, o_w=bf(o_w),
        i_w=bf(i_w), i_b=i_b, out_w=bf(out_w),
        lnf=lnf, cls_w=bf(cls_w), cls_b=cls_b,
    )


# ----------------------------- forward ---------------------------------------

def vit_classifier_forward(prep, pixel_values, cfg: ViTConfig = CFG):
    B, C, H, W = pixel_values.shape
    P = cfg.patch_size
    nh, nw = H // P, W // P
    Np = nh * nw
    S = Np + 1
    pd = C * P * P

    # Patch extraction (pure layout glue): NCHW -> (B, Np, C*P*P), each patch
    # flattened in (C, ph, pw) order (== torch Conv2d(stride=P) weight reshape),
    # then a zero row is inserted at each batch's CLS slot -> (B*S, pd).
    patches = pixel_values.reshape(B, C, nh, P, nw, P)
    patches = patches.transpose(0, 2, 4, 1, 3, 5).reshape(B, Np, pd)
    patches_full = jnp.concatenate(
        [jnp.zeros((B, 1, pd), patches.dtype), patches], axis=1
    ).reshape(B * S, pd).astype(jnp.bfloat16)

    args = (patches_full, prep["tok_add"], prep["attn_mask"], prep["patch_w"],
            prep["ln_vecs"], prep["qkv_w"], prep["qkv_b"], prep["o_w"],
            prep["i_w"], prep["i_b"], prep["out_w"],
            prep["lnf"], prep["cls_w"], prep["cls_b"])

    vspec = pl.BlockSpec(memory_space=pltpu.MemorySpace.VMEM)
    kernel = functools.partial(
        _vit_fused_kernel, num_heads=cfg.num_heads, head_pad=HEAD_PAD,
        eps=cfg.layer_norm_eps, batch=B, seq=S)

    logits_padded = pl.pallas_call(
        kernel,
        out_shape=jax.ShapeDtypeStruct((B, CLS_PAD), jnp.float32),
        in_specs=[vspec] * len(args),
        out_specs=vspec,
    )(*args)
    # labels=None path of the PyTorch module -> loss is None, return logits only.
    return logits_padded[:, :cfg.num_labels]


# ----------------------------- main ------------------------------------------

if __name__ == "__main__":
    BATCH = 2
    params = init_params(CFG, seed=0)
    prep = prepare_params(params, CFG, batch_size=BATCH)

    key = jax.random.PRNGKey(0)
    pixel_values = jax.random.normal(
        key, (BATCH, CFG.num_channels, CFG.image_size, CFG.image_size),
        dtype=jnp.float32)

    fwd = jax.jit(vit_classifier_forward)
    logits = fwd(prep, pixel_values)
    jax.block_until_ready(logits)

    assert logits.shape == (BATCH, CFG.num_labels), logits.shape
    assert logits.dtype == jnp.float32
    assert bool(jnp.all(jnp.isfinite(logits)))
    print("KERNEL_OK")
</pallas_src>

<mosaic_0001>
module attributes {stable_mosaic.version = 11 : i64} {
  func.func @_vit_fused_kernel(%arg0: memref<10x192xbf16, #tpu.memory_space<vmem>>, %arg1: memref<10x32xf32, #tpu.memory_space<vmem>>, %arg2: memref<10x10xf32, #tpu.memory_space<vmem>>, %arg3: memref<192x32xbf16, #tpu.memory_space<vmem>>, %arg4: memref<2x6x32xf32, #tpu.memory_space<vmem>>, %arg5: memref<2x32x768xbf16, #tpu.memory_space<vmem>>, %arg6: memref<2x1x768xf32, #tpu.memory_space<vmem>>, %arg7: memref<2x256x32xbf16, #tpu.memory_space<vmem>>, %arg8: memref<2x32x64xbf16, #tpu.memory_space<vmem>>, %arg9: memref<2x1x64xf32, #tpu.memory_space<vmem>>, %arg10: memref<2x64x32xbf16, #tpu.memory_space<vmem>>, %arg11: memref<2x32xf32, #tpu.memory_space<vmem>>, %arg12: memref<32x128xbf16, #tpu.memory_space<vmem>>, %arg13: memref<1x128xf32, #tpu.memory_space<vmem>>, %arg14: memref<2x128xf32, #tpu.memory_space<vmem>>) attributes {dimension_semantics = [], scalar_prefetch = 0 : i64, scratch_operands = 0 : i64, tpu.core_type = #tpu.core_type<tc>} {
    %c0 = arith.constant 0 : index
    %c0_0 = arith.constant 0 : index
    %0 = vector.load %arg2[%c0, %c0_0] : memref<10x10xf32, #tpu.memory_space<vmem>>, vector<10x10xf32>
    %c0_1 = arith.constant 0 : index
    %c0_2 = arith.constant 0 : index
    %1 = vector.load %arg0[%c0_1, %c0_2] : memref<10x192xbf16, #tpu.memory_space<vmem>>, vector<10x192xbf16>
    %c0_3 = arith.constant 0 : index
    %c0_4 = arith.constant 0 : index
    %2 = vector.load %arg3[%c0_3, %c0_4] : memref<192x32xbf16, #tpu.memory_space<vmem>>, vector<192x32xbf16>
    %cst = arith.constant dense<0.000000e+00> : vector<10x32xf32>
    %3 = tpu.matmul %1, %2, %cst {dimension_numbers = #tpu.dot_dimension_numbers<[1], [0], [0], [1], [0, 0, 1, 1], [], []>} : vector<10x192xbf16>, vector<192x32xbf16>, vector<10x32xf32> -> vector<10x32xf32>
    %c0_5 = arith.constant 0 : index
    %c0_6 = arith.constant 0 : index
    %4 = vector.load %arg1[%c0_5, %c0_6] : memref<10x32xf32, #tpu.memory_space<vmem>>, vector<10x32xf32>
    %5 = arith.addf %3, %4 : vector<10x32xf32>
    %c0_7 = arith.constant 0 : index
    %c0_8 = arith.constant 0 : index
    %c0_9 = arith.constant 0 : index
    %6 = vector.load %arg4[%c0_7, %c0_8, %c0_9] : memref<2x6x32xf32, #tpu.memory_space<vmem>>, vector<1x6x32xf32>
    %7 = vector.shape_cast %6 : vector<1x6x32xf32> to vector<6x32xf32>
    %8 = vector.extract_strided_slice %7 {offsets = [0, 0], sizes = [1, 32], strides = [1, 1]} : vector<6x32xf32> to vector<1x32xf32>
    %9 = vector.extract_strided_slice %7 {offsets = [1, 0], sizes = [1, 32], strides = [1, 1]} : vector<6x32xf32> to vector<1x32xf32>
    %10 = vector.extract_strided_slice %7 {offsets = [2, 0], sizes = [1, 32], strides = [1, 1]} : vector<6x32xf32> to vector<1x32xf32>
    %11 = vector.extract_strided_slice %7 {offsets = [3, 0], sizes = [1, 32], strides = [1, 1]} : vector<6x32xf32> to vector<1x32xf32>
    %12 = vector.extract_strided_slice %7 {offsets = [4, 0], sizes = [1, 32], strides = [1, 1]} : vector<6x32xf32> to vector<1x32xf32>
    %13 = vector.extract_strided_slice %7 {offsets = [5, 0], sizes = [1, 32], strides = [1, 1]} : vector<6x32xf32> to vector<1x32xf32>
    %cst_10 = arith.constant dense<0.000000e+00> : vector<10xf32>
    %14 = vector.multi_reduction <add>, %5, %cst_10 [1] : vector<10x32xf32> to vector<10xf32>
    %15 = vector.shape_cast %14 : vector<10xf32> to vector<10x1xf32>
    %cst_11 = arith.constant 3.200000e+01 : f32
    %16 = vector.broadcast %cst_11 : f32 to vector<10x1xf32>
    %17 = arith.divf %15, %16 : vector<10x1xf32>
    %18 = vector.broadcast %17 : vector<10x1xf32> to vector<10x32xf32>
    %19 = arith.subf %5, %18 : vector<10x32xf32>
    %20 = arith.mulf %19, %19 : vector<10x32xf32>
    %cst_12 = arith.constant dense<0.000000e+00> : vector<10xf32>
    %21 = vector.multi_reduction <add>, %20, %cst_12 [1] : vector<10x32xf32> to vector<10xf32>
    %22 = vector.shape_cast %21 : vector<10xf32> to vector<10x1xf32>
    %cst_13 = arith.constant 3.200000e+01 : f32
    %23 = vector.broadcast %cst_13 : f32 to vector<10x1xf32>
    %24 = arith.divf %22, %23 : vector<10x1xf32>
    %cst_14 = arith.constant 9.99999996E-13 : f32
    %25 = vector.broadcast %cst_14 : f32 to vector<10x1xf32>
    %26 = arith.addf %24, %25 : vector<10x1xf32>
    %27 = math.rsqrt %26 : vector<10x1xf32>
    %28 = vector.broadcast %27 : vector<10x1xf32> to vector<10x32xf32>
    %29 = arith.mulf %19, %28 : vector<10x32xf32>
    %30 = vector.broadcast %8 : vector<1x32xf32> to vector<10x32xf32>
    %31 = arith.mulf %29, %30 : vector<10x32xf32>
    %32 = vector.broadcast %9 : vector<1x32xf32> to vector<10x32xf32>
    %33 = arith.addf %31, %32 : vector<10x32xf32>
    %c0_15 = arith.constant 0 : index
    %c0_16 = arith.constant 0 : index
    %c0_17 = arith.constant 0 : index
    %34 = vector.load %arg5[%c0_15, %c0_16, %c0_17] : memref<2x32x768xbf16, #tpu.memory_space<vmem>>, vector<1x32x768xbf16>
    %35 = vector.shape_cast %34 : vector<1x32x768xbf16> to vector<32x768xbf16>
    %36 = arith.truncf %33 : vector<10x32xf32> to vector<10x32xbf16>
    %cst_18 = arith.constant dense<0.000000e+00> : vector<10x768xf32>
    %37 = tpu.matmul %36, %35, %cst_18 {dimension_numbers = #tpu.dot_dimension_numbers<[1], [0], [0], [1], [0, 0, 1, 1], [], []>} : vector<10x32xbf16>, vector<32x768xbf16>, vector<10x768xf32> -> vector<10x768xf32>
    %c0_19 = arith.constant 0 : index
    %c0_20 = arith.constant 0 : index
    %c0_21 = arith.constant 0 : index
    %38 = vector.load %arg6[%c0_19, %c0_20, %c0_21] : memref<2x1x768xf32, #tpu.memory_space<vmem>>, vector<1x1x768xf32>
    %39 = vector.shape_cast %38 : vector<1x1x768xf32> to vector<1x768xf32>
    %40 = vector.broadcast %39 : vector<1x768xf32> to vector<10x768xf32>
    %41 = arith.addf %37, %40 : vector<10x768xf32>
    %c0_22 = arith.constant 0 : index
    %c0_23 = arith.constant 0 : index
    %c0_24 = arith.constant 0 : index
    %42 = vector.load %arg7[%c0_22, %c0_23, %c0_24] : memref<2x256x32xbf16, #tpu.memory_space<vmem>>, vector<1x256x32xbf16>
    %43 = vector.shape_cast %42 : vector<1x256x32xbf16> to vector<256x32xbf16>
    %cst_25 = arith.constant 0.000000e+00 : f32
    %44 = vector.broadcast %cst_25 : f32 to vector<10x32xf32>
    %45 = vector.extract_strided_slice %41 {offsets = [0, 0], sizes = [10, 128], strides = [1, 1]} : vector<10x768xf32> to vector<10x128xf32>
    %46 = vector.extract_strided_slice %41 {offsets = [0, 128], sizes = [10, 128], strides = [1, 1]} : vector<10x768xf32> to vector<10x128xf32>
    %47 = vector.extract_strided_slice %41 {offsets = [0, 256], sizes = [10, 128], strides = [1, 1]} : vector<10x768xf32> to vector<10x128xf32>
    %48 = arith.truncf %45 : vector<10x128xf32> to vector<10x128xbf16>
    %49 = arith.truncf %46 : vector<10x128xf32> to vector<10x128xbf16>
    "tpu.trace_start"() <{level = 10 : i32, message = "md,nd->mn"}> : () -> ()
    %cst_26 = arith.constant dense<0.000000e+00> : vector<10x10xf32>
    %50 = tpu.matmul %48, %49, %cst_26 {dimension_numbers = #tpu.dot_dimension_numbers<[1], [1], [0], [0], [0, 0, 1, 0], [], []>} : vector<10x128xbf16>, vector<10x128xbf16>, vector<10x10xf32> -> vector<10x10xf32>
    "tpu.trace_stop"() : () -> ()
    %51 = arith.addf %50, %0 : vector<10x10xf32>
    %cst_27 = arith.constant dense<0xFF800000> : vector<10xf32>
    %52 = vector.multi_reduction <maximumf>, %51, %cst_27 [1] : vector<10x10xf32> to vector<10xf32>
    %53 = vector.shape_cast %52 : vector<10xf32> to vector<10x1xf32>
    %54 = vector.broadcast %53 : vector<10x1xf32> to vector<10x10xf32>
    %55 = arith.subf %51, %54 : vector<10x10xf32>
    %56 = math.exp %55 : vector<10x10xf32>
    %cst_28 = arith.constant dense<0.000000e+00> : vector<10xf32>
    %57 = vector.multi_reduction <add>, %56, %cst_28 [1] : vector<10x10xf32> to vector<10xf32>
    %58 = vector.shape_cast %57 : vector<10xf32> to vector<10x1xf32>
    %59 = tpu.reciprocal %58 {approx = true} : vector<10x1xf32> -> vector<10x1xf32>
    %60 = vector.broadcast %59 : vector<10x1xf32> to vector<10x10xf32>
    %61 = arith.mulf %56, %60 : vector<10x10xf32>
    %62 = arith.truncf %61 : vector<10x10xf32> to vector<10x10xbf16>
    %63 = arith.truncf %47 : vector<10x128xf32> to vector<10x128xbf16>
    %cst_29 = arith.constant dense<0.000000e+00> : vector<10x128xf32>
    %64 = tpu.matmul %62, %63, %cst_29 {dimension_numbers = #tpu.dot_dimension_numbers<[1], [0], [0], [1], [0, 0, 1, 1], [], []>} : vector<10x10xbf16>, vector<10x128xbf16>, vector<10x128xf32> -> vector<10x128xf32>
    %65 = vector.extract_strided_slice %43 {offsets = [0, 0], sizes = [128, 32], strides = [1, 1]} : vector<256x32xbf16> to vector<128x32xbf16>
    %66 = arith.truncf %64 : vector<10x128xf32> to vector<10x128xbf16>
    %cst_30 = arith.constant dense<0.000000e+00> : vector<10x32xf32>
    %67 = tpu.matmul %66, %65, %cst_30 {dimension_numbers = #tpu.dot_dimension_numbers<[1], [0], [0], [1], [0, 0, 1, 1], [], []>} : vector<10x128xbf16>, vector<128x32xbf16>, vector<10x32xf32> -> vector<10x32xf32>
    %68 = arith.addf %44, %67 : vector<10x32xf32>
    %69 = vector.extract_strided_slice %41 {offsets = [0, 384], sizes = [10, 128], strides = [1, 1]} : vector<10x768xf32> to vector<10x128xf32>
    %70 = vector.extract_strided_slice %41 {offsets = [0, 512], sizes = [10, 128], strides = [1, 1]} : vector<10x768xf32> to vector<10x128xf32>
    %71 = vector.extract_strided_slice %41 {offsets = [0, 640], sizes = [10, 128], strides = [1, 1]} : vector<10x768xf32> to vector<10x128xf32>
    %72 = arith.truncf %69 : vector<10x128xf32> to vector<10x128xbf16>
    %73 = arith.truncf %70 : vector<10x128xf32> to vector<10x128xbf16>
    "tpu.trace_start"() <{level = 10 : i32, message = "md,nd->mn"}> : () -> ()
    %cst_31 = arith.constant dense<0.000000e+00> : vector<10x10xf32>
    %74 = tpu.matmul %72, %73, %cst_31 {dimension_numbers = #tpu.dot_dimension_numbers<[1], [1], [0], [0], [0, 0, 1, 0], [], []>} : vector<10x128xbf16>, vector<10x128xbf16>, vector<10x10xf32> -> vector<10x10xf32>
    "tpu.trace_stop"() : () -> ()
    %75 = arith.addf %74, %0 : vector<10x10xf32>
    %cst_32 = arith.constant dense<0xFF800000> : vector<10xf32>
    %76 = vector.multi_reduction <maximumf>, %75, %cst_32 [1] : vector<10x10xf32> to vector<10xf32>
    %77 = vector.shape_cast %76 : vector<10xf32> to vector<10x1xf32>
    %78 = vector.broadcast %77 : vector<10x1xf32> to vector<10x10xf32>
    %79 = arith.subf %75, %78 : vector<10x10xf32>
    %80 = math.exp %79 : vector<10x10xf32>
    %cst_33 = arith.constant dense<0.000000e+00> : vector<10xf32>
    %81 = vector.multi_reduction <add>, %80, %cst_33 [1] : vector<10x10xf32> to vector<10xf32>
    %82 = vector.shape_cast %81 : vector<10xf32> to vector<10x1xf32>
    %83 = tpu.reciprocal %82 {approx = true} : vector<10x1xf32> -> vector<10x1xf32>
    %84 = vector.broadcast %83 : vector<10x1xf32> to vector<10x10xf32>
    %85 = arith.mulf %80, %84 : vector<10x10xf32>
    %86 = arith.truncf %85 : vector<10x10xf32> to vector<10x10xbf16>
    %87 = arith.truncf %71 : vector<10x128xf32> to vector<10x128xbf16>
    %cst_34 = arith.constant dense<0.000000e+00> : vector<10x128xf32>
    %88 = tpu.matmul %86, %87, %cst_34 {dimension_numbers = #tpu.dot_dimension_numbers<[1], [0], [0], [1], [0, 0, 1, 1], [], []>} : vector<10x10xbf16>, vector<10x128xbf16>, vector<10x128xf32> -> vector<10x128xf32>
    %89 = vector.extract_strided_slice %43 {offsets = [128, 0], sizes = [128, 32], strides = [1, 1]} : vector<256x32xbf16> to vector<128x32xbf16>
    %90 = arith.truncf %88 : vector<10x128xf32> to vector<10x128xbf16>
    %cst_35 = arith.constant dense<0.000000e+00> : vector<10x32xf32>
    %91 = tpu.matmul %90, %89, %cst_35 {dimension_numbers = #tpu.dot_dimension_numbers<[1], [0], [0], [1], [0, 0, 1, 1], [], []>} : vector<10x128xbf16>, vector<128x32xbf16>, vector<10x32xf32> -> vector<10x32xf32>
    %92 = arith.addf %68, %91 : vector<10x32xf32>
    %93 = arith.addf %5, %92 : vector<10x32xf32>
    %94 = vector.broadcast %10 : vector<1x32xf32> to vector<10x32xf32>
    %95 = arith.addf %93, %94 : vector<10x32xf32>
    %cst_36 = arith.constant dense<0.000000e+00> : vector<10xf32>
    %96 = vector.multi_reduction <add>, %95, %cst_36 [1] : vector<10x32xf32> to vector<10xf32>
    %97 = vector.shape_cast %96 : vector<10xf32> to vector<10x1xf32>
    %cst_37 = arith.constant 3.200000e+01 : f32
    %98 = vector.broadcast %cst_37 : f32 to vector<10x1xf32>
    %99 = arith.divf %97, %98 : vector<10x1xf32>
    %100 = vector.broadcast %99 : vector<10x1xf32> to vector<10x32xf32>
    %101 = arith.subf %95, %100 : vector<10x32xf32>
    %102 = arith.mulf %101, %101 : vector<10x32xf32>
    %cst_38 = arith.constant dense<0.000000e+00> : vector<10xf32>
    %103 = vector.multi_reduction <add>, %102, %cst_38 [1] : vector<10x32xf32> to vector<10xf32>
    %104 = vector.shape_cast %103 : vector<10xf32> to vector<10x1xf32>
    %cst_39 = arith.constant 3.200000e+01 : f32
    %105 = vector.broadcast %cst_39 : f32 to vector<10x1xf32>
    %106 = arith.divf %104, %105 : vector<10x1xf32>
    %cst_40 = arith.constant 9.99999996E-13 : f32
    %107 = vector.broadcast %cst_40 : f32 to vector<10x1xf32>
    %108 = arith.addf %106, %107 : vector<10x1xf32>
    %109 = math.rsqrt %108 : vector<10x1xf32>
    %110 = vector.broadcast %109 : vector<10x1xf32> to vector<10x32xf32>
    %111 = arith.mulf %101, %110 : vector<10x32xf32>
    %112 = vector.broadcast %11 : vector<1x32xf32> to vector<10x32xf32>
    %113 = arith.mulf %111, %112 : vector<10x32xf32>
    %114 = vector.broadcast %12 : vector<1x32xf32> to vector<10x32xf32>
    %115 = arith.addf %113, %114 : vector<10x32xf32>
    %c0_41 = arith.constant 0 : index
    %c0_42 = arith.constant 0 : index
    %c0_43 = arith.constant 0 : index
    %116 = vector.load %arg8[%c0_41, %c0_42, %c0_43] : memref<2x32x64xbf16, #tpu.memory_space<vmem>>, vector<1x32x64xbf16>
    %117 = vector.shape_cast %116 : vector<1x32x64xbf16> to vector<32x64xbf16>
    %118 = arith.truncf %115 : vector<10x32xf32> to vector<10x32xbf16>
    %cst_44 = arith.constant dense<0.000000e+00> : vector<10x64xf32>
    %119 = tpu.matmul %118, %117, %cst_44 {dimension_numbers = #tpu.dot_dimension_numbers<[1], [0], [0], [1], [0, 0, 1, 1], [], []>} : vector<10x32xbf16>, vector<32x64xbf16>, vector<10x64xf32> -> vector<10x64xf32>
    %c0_45 = arith.constant 0 : index
    %c0_46 = arith.constant 0 : index
    %c0_47 = arith.constant 0 : index
    %120 = vector.load %arg9[%c0_45, %c0_46, %c0_47] : memref<2x1x64xf32, #tpu.memory_space<vmem>>, vector<1x1x64xf32>
    %121 = vector.shape_cast %120 : vector<1x1x64xf32> to vector<1x64xf32>
    %122 = vector.broadcast %121 : vector<1x64xf32> to vector<10x64xf32>
    %123 = arith.addf %119, %122 : vector<10x64xf32>
    %cst_48 = arith.constant 5.000000e-01 : f32
    %124 = vector.broadcast %cst_48 : f32 to vector<10x64xf32>
    %125 = arith.mulf %124, %123 : vector<10x64xf32>
    %cst_49 = arith.constant 0.707106769 : f32
    %126 = vector.broadcast %cst_49 : f32 to vector<10x64xf32>
    %127 = arith.mulf %123, %126 : vector<10x64xf32>
    %128 = math.absf %127 : vector<10x64xf32>
    %cst_50 = arith.constant 0.327591091 : f32
    %129 = vector.broadcast %cst_50 : f32 to vector<10x64xf32>
    %130 = arith.mulf %129, %128 : vector<10x64xf32>
    %cst_51 = arith.constant 1.000000e+00 : f32
    %131 = vector.broadcast %cst_51 : f32 to vector<10x64xf32>
    %132 = arith.addf %131, %130 : vector<10x64xf32>
    %cst_52 = arith.constant 1.000000e+00 : f32
    %133 = vector.broadcast %cst_52 : f32 to vector<10x64xf32>
    %134 = arith.divf %133, %132 : vector<10x64xf32>
    %cst_53 = arith.constant 1.06140542 : f32
    %135 = vector.broadcast %cst_53 : f32 to vector<10x64xf32>
    %136 = arith.mulf %135, %134 : vector<10x64xf32>
    %cst_54 = arith.constant -1.45315206 : f32
    %137 = vector.broadcast %cst_54 : f32 to vector<10x64xf32>
    %138 = arith.addf %136, %137 : vector<10x64xf32>
    %139 = arith.mulf %138, %134 : vector<10x64xf32>
    %cst_55 = arith.constant 1.42141378 : f32
    %140 = vector.broadcast %cst_55 : f32 to vector<10x64xf32>
    %141 = arith.addf %139, %140 : vector<10x64xf32>
    %142 = arith.mulf %141, %134 : vector<10x64xf32>
    %cst_56 = arith.constant -0.284496725 : f32
    %143 = vector.broadcast %cst_56 : f32 to vector<10x64xf32>
    %144 = arith.addf %142, %143 : vector<10x64xf32>
    %145 = arith.mulf %144, %134 : vector<10x64xf32>
    %cst_57 = arith.constant 0.254829586 : f32
    %146 = vector.broadcast %cst_57 : f32 to vector<10x64xf32>
    %147 = arith.addf %145, %146 : vector<10x64xf32>
    %148 = arith.mulf %147, %134 : vector<10x64xf32>
    %cst_58 = arith.constant 0.000000e+00 : f32
    %149 = vector.broadcast %cst_58 : f32 to vector<10x64xf32>
    %150 = arith.subf %149, %128 : vector<10x64xf32>
    %151 = arith.mulf %150, %128 : vector<10x64xf32>
    %152 = math.exp %151 : vector<10x64xf32>
    %153 = arith.mulf %148, %152 : vector<10x64xf32>
    %cst_59 = arith.constant 1.000000e+00 : f32
    %154 = vector.broadcast %cst_59 : f32 to vector<10x64xf32>
    %155 = arith.subf %154, %153 : vector<10x64xf32>
    %cst_60 = arith.constant 0.000000e+00 : f32
    %156 = vector.broadcast %cst_60 : f32 to vector<10x64xf32>
    %157 = arith.cmpf oge, %127, %156 : vector<10x64xf32>
    %cst_61 = arith.constant 0.000000e+00 : f32
    %158 = vector.broadcast %cst_61 : f32 to vector<10x64xf32>
    %159 = arith.subf %158, %155 : vector<10x64xf32>
    %160 = arith.select %157, %155, %159 : vector<10x64xi1>, vector<10x64xf32>
    %cst_62 = arith.constant 1.000000e+00 : f32
    %161 = vector.broadcast %cst_62 : f32 to vector<10x64xf32>
    %162 = arith.addf %161, %160 : vector<10x64xf32>
    %163 = arith.mulf %125, %162 : vector<10x64xf32>
    %c0_63 = arith.constant 0 : index
    %c0_64 = arith.constant 0 : index
    %c0_65 = arith.constant 0 : index
    %164 = vector.load %arg10[%c0_63, %c0_64, %c0_65] : memref<2x64x32xbf16, #tpu.memory_space<vmem>>, vector<1x64x32xbf16>
    %165 = vector.shape_cast %164 : vector<1x64x32xbf16> to vector<64x32xbf16>
    %166 = arith.truncf %163 : vector<10x64xf32> to vector<10x64xbf16>
    %cst_66 = arith.constant dense<0.000000e+00> : vector<10x32xf32>
    %167 = tpu.matmul %166, %165, %cst_66 {dimension_numbers = #tpu.dot_dimension_numbers<[1], [0], [0], [1], [0, 0, 1, 1], [], []>} : vector<10x64xbf16>, vector<64x32xbf16>, vector<10x32xf32> -> vector<10x32xf32>
    %168 = arith.addf %95, %167 : vector<10x32xf32>
    %169 = vector.broadcast %13 : vector<1x32xf32> to vector<10x32xf32>
    %170 = arith.addf %168, %169 : vector<10x32xf32>
    %c1 = arith.constant 1 : index
    %c0_67 = arith.constant 0 : index
    %c0_68 = arith.constant 0 : index
    %171 = vector.load %arg4[%c1, %c0_67, %c0_68] : memref<2x6x32xf32, #tpu.memory_space<vmem>>, vector<1x6x32xf32>
    %172 = vector.shape_cast %171 : vector<1x6x32xf32> to vector<6x32xf32>
    %173 = vector.extract_strided_slice %172 {offsets = [0, 0], sizes = [1, 32], strides = [1, 1]} : vector<6x32xf32> to vector<1x32xf32>
    %174 = vector.extract_strided_slice %172 {offsets = [1, 0], sizes = [1, 32], strides = [1, 1]} : vector<6x32xf32> to vector<1x32xf32>
    %175 = vector.extract_strided_slice %172 {offsets = [2, 0], sizes = [1, 32], strides = [1, 1]} : vector<6x32xf32> to vector<1x32xf32>
    %176 = vector.extract_strided_slice %172 {offsets = [3, 0], sizes = [1, 32], strides = [1, 1]} : vector<6x32xf32> to vector<1x32xf32>
    %177 = vector.extract_strided_slice %172 {offsets = [4, 0], sizes = [1, 32], strides = [1, 1]} : vector<6x32xf32> to vector<1x32xf32>
    %178 = vector.extract_strided_slice %172 {offsets = [5, 0], sizes = [1, 32], strides = [1, 1]} : vector<6x32xf32> to vector<1x32xf32>
    %cst_69 = arith.constant dense<0.000000e+00> : vector<10xf32>
    %179 = vector.multi_reduction <add>, %170, %cst_69 [1] : vector<10x32xf32> to vector<10xf32>
    %180 = vector.shape_cast %179 : vector<10xf32> to vector<10x1xf32>
    %cst_70 = arith.constant 3.200000e+01 : f32
    %181 = vector.broadcast %cst_70 : f32 to vector<10x1xf32>
    %182 = arith.divf %180, %181 : vector<10x1xf32>
    %183 = vector.broadcast %182 : vector<10x1xf32> to vector<10x32xf32>
    %184 = arith.subf %170, %183 : vector<10x32xf32>
    %185 = arith.mulf %184, %184 : vector<10x32xf32>
    %cst_71 = arith.constant dense<0.000000e+00> : vector<10xf32>
    %186 = vector.multi_reduction <add>, %185, %cst_71 [1] : vector<10x32xf32> to vector<10xf32>
    %187 = vector.shape_cast %186 : vector<10xf32> to vector<10x1xf32>
    %cst_72 = arith.constant 3.200000e+01 : f32
    %188 = vector.broadcast %cst_72 : f32 to vector<10x1xf32>
    %189 = arith.divf %187, %188 : vector<10x1xf32>
    %cst_73 = arith.constant 9.99999996E-13 : f32
    %190 = vector.broadcast %cst_73 : f32 to vector<10x1xf32>
    %191 = arith.addf %189, %190 : vector<10x1xf32>
    %192 = math.rsqrt %191 : vector<10x1xf32>
    %193 = vector.broadcast %192 : vector<10x1xf32> to vector<10x32xf32>
    %194 = arith.mulf %184, %193 : vector<10x32xf32>
    %195 = vector.broadcast %173 : vector<1x32xf32> to vector<10x32xf32>
    %196 = arith.mulf %194, %195 : vector<10x32xf32>
    %197 = vector.broadcast %174 : vector<1x32xf32> to vector<10x32xf32>
    %198 = arith.addf %196, %197 : vector<10x32xf32>
    %c1_74 = arith.constant 1 : index
    %c0_75 = arith.constant 0 : index
    %c0_76 = arith.constant 0 : index
    %199 = vector.load %arg5[%c1_74, %c0_75, %c0_76] : memref<2x32x768xbf16, #tpu.memory_space<vmem>>, vector<1x32x768xbf16>
    %200 = vector.shape_cast %199 : vector<1x32x768xbf16> to vector<32x768xbf16>
    %201 = arith.truncf %198 : vector<10x32xf32> to vector<10x32xbf16>
    %cst_77 = arith.constant dense<0.000000e+00> : vector<10x768xf32>
    %202 = tpu.matmul %201, %200, %cst_77 {dimension_numbers = #tpu.dot_dimension_numbers<[1], [0], [0], [1], [0, 0, 1, 1], [], []>} : vector<10x32xbf16>, vector<32x768xbf16>, vector<10x768xf32> -> vector<10x768xf32>
    %c1_78 = arith.constant 1 : index
    %c0_79 = arith.constant 0 : index
    %c0_80 = arith.constant 0 : index
    %203 = vector.load %arg6[%c1_78, %c0_79, %c0_80] : memref<2x1x768xf32, #tpu.memory_space<vmem>>, vector<1x1x768xf32>
    %204 = vector.shape_cast %203 : vector<1x1x768xf32> to vector<1x768xf32>
    %205 = vector.broadcast %204 : vector<1x768xf32> to vector<10x768xf32>
    %206 = arith.addf %202, %205 : vector<10x768xf32>
    %c1_81 = arith.constant 1 : index
    %c0_82 = arith.constant 0 : index
    %c0_83 = arith.constant 0 : index
    %207 = vector.load %arg7[%c1_81, %c0_82, %c0_83] : memref<2x256x32xbf16, #tpu.memory_space<vmem>>, vector<1x256x32xbf16>
    %208 = vector.shape_cast %207 : vector<1x256x32xbf16> to vector<256x32xbf16>
    %cst_84 = arith.constant 0.000000e+00 : f32
    %209 = vector.broadcast %cst_84 : f32 to vector<10x32xf32>
    %210 = vector.extract_strided_slice %206 {offsets = [0, 0], sizes = [10, 128], strides = [1, 1]} : vector<10x768xf32> to vector<10x128xf32>
    %211 = vector.extract_strided_slice %206 {offsets = [0, 128], sizes = [10, 128], strides = [1, 1]} : vector<10x768xf32> to vector<10x128xf32>
    %212 = vector.extract_strided_slice %206 {offsets = [0, 256], sizes = [10, 128], strides = [1, 1]} : vector<10x768xf32> to vector<10x128xf32>
    %213 = arith.truncf %210 : vector<10x128xf32> to vector<10x128xbf16>
    %214 = arith.truncf %211 : vector<10x128xf32> to vector<10x128xbf16>
    "tpu.trace_start"() <{level = 10 : i32, message = "md,nd->mn"}> : () -> ()
    %cst_85 = arith.constant dense<0.000000e+00> : vector<10x10xf32>
    %215 = tpu.matmul %213, %214, %cst_85 {dimension_numbers = #tpu.dot_dimension_numbers<[1], [1], [0], [0], [0, 0, 1, 0], [], []>} : vector<10x128xbf16>, vector<10x128xbf16>, vector<10x10xf32> -> vector<10x10xf32>
    "tpu.trace_stop"() : () -> ()
    %216 = arith.addf %215, %0 : vector<10x10xf32>
    %cst_86 = arith.constant dense<0xFF800000> : vector<10xf32>
    %217 = vector.multi_reduction <maximumf>, %216, %cst_86 [1] : vector<10x10xf32> to vector<10xf32>
    %218 = vector.shape_cast %217 : vector<10xf32> to vector<10x1xf32>
    %219 = vector.broadcast %218 : vector<10x1xf32> to vector<10x10xf32>
    %220 = arith.subf %216, %219 : vector<10x10xf32>
    %221 = math.exp %220 : vector<10x10xf32>
    %cst_87 = arith.constant dense<0.000000e+00> : vector<10xf32>
    %222 = vector.multi_reduction <add>, %221, %cst_87 [1] : vector<10x10xf32> to vector<10xf32>
    %223 = vector.shape_cast %222 : vector<10xf32> to vector<10x1xf32>
    %224 = tpu.reciprocal %223 {approx = true} : vector<10x1xf32> -> vector<10x1xf32>
    %225 = vector.broadcast %224 : vector<10x1xf32> to vector<10x10xf32>
    %226 = arith.mulf %221, %225 : vector<10x10xf32>
    %227 = arith.truncf %226 : vector<10x10xf32> to vector<10x10xbf16>
    %228 = arith.truncf %212 : vector<10x128xf32> to vector<10x128xbf16>
    %cst_88 = arith.constant dense<0.000000e+00> : vector<10x128xf32>
    %229 = tpu.matmul %227, %228, %cst_88 {dimension_numbers = #tpu.dot_dimension_numbers<[1], [0], [0], [1], [0, 0, 1, 1], [], []>} : vector<10x10xbf16>, vector<10x128xbf16>, vector<10x128xf32> -> vector<10x128xf32>
    %230 = vector.extract_strided_slice %208 {offsets = [0, 0], sizes = [128, 32], strides = [1, 1]} : vector<256x32xbf16> to vector<128x32xbf16>
    %231 = arith.truncf %229 : vector<10x128xf32> to vector<10x128xbf16>
    %cst_89 = arith.constant dense<0.000000e+00> : vector<10x32xf32>
    %232 = tpu.matmul %231, %230, %cst_89 {dimension_numbers = #tpu.dot_dimension_numbers<[1], [0], [0], [1], [0, 0, 1, 1], [], []>} : vector<10x128xbf16>, vector<128x32xbf16>, vector<10x32xf32> -> vector<10x32xf32>
    %233 = arith.addf %209, %232 : vector<10x32xf32>
    %234 = vector.extract_strided_slice %206 {offsets = [0, 384], sizes = [10, 128], strides = [1, 1]} : vector<10x768xf32> to vector<10x128xf32>
    %235 = vector.extract_strided_slice %206 {offsets = [0, 512], sizes = [10, 128], strides = [1, 1]} : vector<10x768xf32> to vector<10x128xf32>
    %236 = vector.extract_strided_slice %206 {offsets = [0, 640], sizes = [10, 128], strides = [1, 1]} : vector<10x768xf32> to vector<10x128xf32>
    %237 = arith.truncf %234 : vector<10x128xf32> to vector<10x128xbf16>
    %238 = arith.truncf %235 : vector<10x128xf32> to vector<10x128xbf16>
    "tpu.trace_start"() <{level = 10 : i32, message = "md,nd->mn"}> : () -> ()
    %cst_90 = arith.constant dense<0.000000e+00> : vector<10x10xf32>
    %239 = tpu.matmul %237, %238, %cst_90 {dimension_numbers = #tpu.dot_dimension_numbers<[1], [1], [0], [0], [0, 0, 1, 0], [], []>} : vector<10x128xbf16>, vector<10x128xbf16>, vector<10x10xf32> -> vector<10x10xf32>
    "tpu.trace_stop"() : () -> ()
    %240 = arith.addf %239, %0 : vector<10x10xf32>
    %cst_91 = arith.constant dense<0xFF800000> : vector<10xf32>
    %241 = vector.multi_reduction <maximumf>, %240, %cst_91 [1] : vector<10x10xf32> to vector<10xf32>
    %242 = vector.shape_cast %241 : vector<10xf32> to vector<10x1xf32>
    %243 = vector.broadcast %242 : vector<10x1xf32> to vector<10x10xf32>
    %244 = arith.subf %240, %243 : vector<10x10xf32>
    %245 = math.exp %244 : vector<10x10xf32>
    %cst_92 = arith.constant dense<0.000000e+00> : vector<10xf32>
    %246 = vector.multi_reduction <add>, %245, %cst_92 [1] : vector<10x10xf32> to vector<10xf32>
    %247 = vector.shape_cast %246 : vector<10xf32> to vector<10x1xf32>
    %248 = tpu.reciprocal %247 {approx = true} : vector<10x1xf32> -> vector<10x1xf32>
    %249 = vector.broadcast %248 : vector<10x1xf32> to vector<10x10xf32>
    %250 = arith.mulf %245, %249 : vector<10x10xf32>
    %251 = arith.truncf %250 : vector<10x10xf32> to vector<10x10xbf16>
    %252 = arith.truncf %236 : vector<10x128xf32> to vector<10x128xbf16>
    %cst_93 = arith.constant dense<0.000000e+00> : vector<10x128xf32>
    %253 = tpu.matmul %251, %252, %cst_93 {dimension_numbers = #tpu.dot_dimension_numbers<[1], [0], [0], [1], [0, 0, 1, 1], [], []>} : vector<10x10xbf16>, vector<10x128xbf16>, vector<10x128xf32> -> vector<10x128xf32>
    %254 = vector.extract_strided_slice %208 {offsets = [128, 0], sizes = [128, 32], strides = [1, 1]} : vector<256x32xbf16> to vector<128x32xbf16>
    %255 = arith.truncf %253 : vector<10x128xf32> to vector<10x128xbf16>
    %cst_94 = arith.constant dense<0.000000e+00> : vector<10x32xf32>
    %256 = tpu.matmul %255, %254, %cst_94 {dimension_numbers = #tpu.dot_dimension_numbers<[1], [0], [0], [1], [0, 0, 1, 1], [], []>} : vector<10x128xbf16>, vector<128x32xbf16>, vector<10x32xf32> -> vector<10x32xf32>
    %257 = arith.addf %233, %256 : vector<10x32xf32>
    %258 = arith.addf %170, %257 : vector<10x32xf32>
    %259 = vector.broadcast %175 : vector<1x32xf32> to vector<10x32xf32>
    %260 = arith.addf %258, %259 : vector<10x32xf32>
    %cst_95 = arith.constant dense<0.000000e+00> : vector<10xf32>
    %261 = vector.multi_reduction <add>, %260, %cst_95 [1] : vector<10x32xf32> to vector<10xf32>
    %262 = vector.shape_cast %261 : vector<10xf32> to vector<10x1xf32>
    %cst_96 = arith.constant 3.200000e+01 : f32
    %263 = vector.broadcast %cst_96 : f32 to vector<10x1xf32>
    %264 = arith.divf %262, %263 : vector<10x1xf32>
    %265 = vector.broadcast %264 : vector<10x1xf32> to vector<10x32xf32>
    %266 = arith.subf %260, %265 : vector<10x32xf32>
    %267 = arith.mulf %266, %266 : vector<10x32xf32>
    %cst_97 = arith.constant dense<0.000000e+00> : vector<10xf32>
    %268 = vector.multi_reduction <add>, %267, %cst_97 [1] : vector<10x32xf32> to vector<10xf32>
    %269 = vector.shape_cast %268 : vector<10xf32> to vector<10x1xf32>
    %cst_98 = arith.constant 3.200000e+01 : f32
    %270 = vector.broadcast %cst_98 : f32 to vector<10x1xf32>
    %271 = arith.divf %269, %270 : vector<10x1xf32>
    %cst_99 = arith.constant 9.99999996E-13 : f32
    %272 = vector.broadcast %cst_99 : f32 to vector<10x1xf32>
    %273 = arith.addf %271, %272 : vector<10x1xf32>
    %274 = math.rsqrt %273 : vector<10x1xf32>
    %275 = vector.broadcast %274 : vector<10x1xf32> to vector<10x32xf32>
    %276 = arith.mulf %266, %275 : vector<10x32xf32>
    %277 = vector.broadcast %176 : vector<1x32xf32> to vector<10x32xf32>
    %278 = arith.mulf %276, %277 : vector<10x32xf32>
    %279 = vector.broadcast %177 : vector<1x32xf32> to vector<10x32xf32>
    %280 = arith.addf %278, %279 : vector<10x32xf32>
    %c1_100 = arith.constant 1 : index
    %c0_101 = arith.constant 0 : index
    %c0_102 = arith.constant 0 : index
    %281 = vector.load %arg8[%c1_100, %c0_101, %c0_102] : memref<2x32x64xbf16, #tpu.memory_space<vmem>>, vector<1x32x64xbf16>
    %282 = vector.shape_cast %281 : vector<1x32x64xbf16> to vector<32x64xbf16>
    %283 = arith.truncf %280 : vector<10x32xf32> to vector<10x32xbf16>
    %cst_103 = arith.constant dense<0.000000e+00> : vector<10x64xf32>
    %284 = tpu.matmul %283, %282, %cst_103 {dimension_numbers = #tpu.dot_dimension_numbers<[1], [0], [0], [1], [0, 0, 1, 1], [], []>} : vector<10x32xbf16>, vector<32x64xbf16>, vector<10x64xf32> -> vector<10x64xf32>
    %c1_104 = arith.constant 1 : index
    %c0_105 = arith.constant 0 : index
    %c0_106 = arith.constant 0 : index
    %285 = vector.load %arg9[%c1_104, %c0_105, %c0_106] : memref<2x1x64xf32, #tpu.memory_space<vmem>>, vector<1x1x64xf32>
    %286 = vector.shape_cast %285 : vector<1x1x64xf32> to vector<1x64xf32>
    %287 = vector.broadcast %286 : vector<1x64xf32> to vector<10x64xf32>
    %288 = arith.addf %284, %287 : vector<10x64xf32>
    %cst_107 = arith.constant 5.000000e-01 : f32
    %289 = vector.broadcast %cst_107 : f32 to vector<10x64xf32>
    %290 = arith.mulf %289, %288 : vector<10x64xf32>
    %cst_108 = arith.constant 0.707106769 : f32
    %291 = vector.broadcast %cst_108 : f32 to vector<10x64xf32>
    %292 = arith.mulf %288, %291 : vector<10x64xf32>
    %293 = math.absf %292 : vector<10x64xf32>
    %cst_109 = arith.constant 0.327591091 : f32
    %294 = vector.broadcast %cst_109 : f32 to vector<10x64xf32>
    %295 = arith.mulf %294, %293 : vector<10x64xf32>
    %cst_110 = arith.constant 1.000000e+00 : f32
    %296 = vector.broadcast %cst_110 : f32 to vector<10x64xf32>
    %297 = arith.addf %296, %295 : vector<10x64xf32>
    %cst_111 = arith.constant 1.000000e+00 : f32
    %298 = vector.broadcast %cst_111 : f32 to vector<10x64xf32>
    %299 = arith.divf %298, %297 : vector<10x64xf32>
    %cst_112 = arith.constant 1.06140542 : f32
    %300 = vector.broadcast %cst_112 : f32 to vector<10x64xf32>
    %301 = arith.mulf %300, %299 : vector<10x64xf32>
    %cst_113 = arith.constant -1.45315206 : f32
    %302 = vector.broadcast %cst_113 : f32 to vector<10x64xf32>
    %303 = arith.addf %301, %302 : vector<10x64xf32>
    %304 = arith.mulf %303, %299 : vector<10x64xf32>
    %cst_114 = arith.constant 1.42141378 : f32
    %305 = vector.broadcast %cst_114 : f32 to vector<10x64xf32>
    %306 = arith.addf %304, %305 : vector<10x64xf32>
    %307 = arith.mulf %306, %299 : vector<10x64xf32>
    %cst_115 = arith.constant -0.284496725 : f32
    %308 = vector.broadcast %cst_115 : f32 to vector<10x64xf32>
    %309 = arith.addf %307, %308 : vector<10x64xf32>
    %310 = arith.mulf %309, %299 : vector<10x64xf32>
    %cst_116 = arith.constant 0.254829586 : f32
    %311 = vector.broadcast %cst_116 : f32 to vector<10x64xf32>
    %312 = arith.addf %310, %311 : vector<10x64xf32>
    %313 = arith.mulf %312, %299 : vector<10x64xf32>
    %cst_117 = arith.constant 0.000000e+00 : f32
    %314 = vector.broadcast %cst_117 : f32 to vector<10x64xf32>
    %315 = arith.subf %314, %293 : vector<10x64xf32>
    %316 = arith.mulf %315, %293 : vector<10x64xf32>
    %317 = math.exp %316 : vector<10x64xf32>
    %318 = arith.mulf %313, %317 : vector<10x64xf32>
    %cst_118 = arith.constant 1.000000e+00 : f32
    %319 = vector.broadcast %cst_118 : f32 to vector<10x64xf32>
    %320 = arith.subf %319, %318 : vector<10x64xf32>
    %cst_119 = arith.constant 0.000000e+00 : f32
    %321 = vector.broadcast %cst_119 : f32 to vector<10x64xf32>
    %322 = arith.cmpf oge, %292, %321 : vector<10x64xf32>
    %cst_120 = arith.constant 0.000000e+00 : f32
    %323 = vector.broadcast %cst_120 : f32 to vector<10x64xf32>
    %324 = arith.subf %323, %320 : vector<10x64xf32>
    %325 = arith.select %322, %320, %324 : vector<10x64xi1>, vector<10x64xf32>
    %cst_121 = arith.constant 1.000000e+00 : f32
    %326 = vector.broadcast %cst_121 : f32 to vector<10x64xf32>
    %327 = arith.addf %326, %325 : vector<10x64xf32>
    %328 = arith.mulf %290, %327 : vector<10x64xf32>
    %c1_122 = arith.constant 1 : index
    %c0_123 = arith.constant 0 : index
    %c0_124 = arith.constant 0 : index
    %329 = vector.load %arg10[%c1_122, %c0_123, %c0_124] : memref<2x64x32xbf16, #tpu.memory_space<vmem>>, vector<1x64x32xbf16>
    %330 = vector.shape_cast %329 : vector<1x64x32xbf16> to vector<64x32xbf16>
    %331 = arith.truncf %328 : vector<10x64xf32> to vector<10x64xbf16>
    %cst_125 = arith.constant dense<0.000000e+00> : vector<10x32xf32>
    %332 = tpu.matmul %331, %330, %cst_125 {dimension_numbers = #tpu.dot_dimension_numbers<[1], [0], [0], [1], [0, 0, 1, 1], [], []>} : vector<10x64xbf16>, vector<64x32xbf16>, vector<10x32xf32> -> vector<10x32xf32>
    %333 = arith.addf %260, %332 : vector<10x32xf32>
    %334 = vector.broadcast %178 : vector<1x32xf32> to vector<10x32xf32>
    %335 = arith.addf %333, %334 : vector<10x32xf32>
    %336 = vector.extract_strided_slice %335 {offsets = [0, 0], sizes = [1, 32], strides = [1, 1]} : vector<10x32xf32> to vector<1x32xf32>
    %337 = vector.extract_strided_slice %335 {offsets = [5, 0], sizes = [1, 32], strides = [1, 1]} : vector<10x32xf32> to vector<1x32xf32>
    %338 = tpu.concatenate %336, %337 in 0 : vector<1x32xf32>, vector<1x32xf32> -> vector<2x32xf32>
    %c0_126 = arith.constant 0 : index
    %c0_127 = arith.constant 0 : index
    %339 = vector.load %arg11[%c0_126, %c0_127] : memref<2x32xf32, #tpu.memory_space<vmem>>, vector<2x32xf32>
    %340 = vector.extract_strided_slice %339 {offsets = [0, 0], sizes = [1, 32], strides = [1, 1]} : vector<2x32xf32> to vector<1x32xf32>
    %341 = vector.extract_strided_slice %339 {offsets = [1, 0], sizes = [1, 32], strides = [1, 1]} : vector<2x32xf32> to vector<1x32xf32>
    %cst_128 = arith.constant dense<0.000000e+00> : vector<2xf32>
    %342 = vector.multi_reduction <add>, %338, %cst_128 [1] : vector<2x32xf32> to vector<2xf32>
    %343 = vector.shape_cast %342 : vector<2xf32> to vector<2x1xf32>
    %cst_129 = arith.constant 3.200000e+01 : f32
    %344 = vector.broadcast %cst_129 : f32 to vector<2x1xf32>
    %345 = arith.divf %343, %344 : vector<2x1xf32>
    %346 = vector.broadcast %345 : vector<2x1xf32> to vector<2x32xf32>
    %347 = arith.subf %338, %346 : vector<2x32xf32>
    %348 = arith.mulf %347, %347 : vector<2x32xf32>
    %cst_130 = arith.constant dense<0.000000e+00> : vector<2xf32>
    %349 = vector.multi_reduction <add>, %348, %cst_130 [1] : vector<2x32xf32> to vector<2xf32>
    %350 = vector.shape_cast %349 : vector<2xf32> to vector<2x1xf32>
    %cst_131 = arith.constant 3.200000e+01 : f32
    %351 = vector.broadcast %cst_131 : f32 to vector<2x1xf32>
    %352 = arith.divf %350, %351 : vector<2x1xf32>
    %cst_132 = arith.constant 9.99999996E-13 : f32
    %353 = vector.broadcast %cst_132 : f32 to vector<2x1xf32>
    %354 = arith.addf %352, %353 : vector<2x1xf32>
    %355 = math.rsqrt %354 : vector<2x1xf32>
    %356 = vector.broadcast %355 : vector<2x1xf32> to vector<2x32xf32>
    %357 = arith.mulf %347, %356 : vector<2x32xf32>
    %358 = vector.broadcast %340 : vector<1x32xf32> to vector<2x32xf32>
    %359 = arith.mulf %357, %358 : vector<2x32xf32>
    %360 = vector.broadcast %341 : vector<1x32xf32> to vector<2x32xf32>
    %361 = arith.addf %359, %360 : vector<2x32xf32>
    %c0_133 = arith.constant 0 : index
    %c0_134 = arith.constant 0 : index
    %362 = vector.load %arg12[%c0_133, %c0_134] : memref<32x128xbf16, #tpu.memory_space<vmem>>, vector<32x128xbf16>
    %363 = arith.truncf %361 : vector<2x32xf32> to vector<2x32xbf16>
    %cst_135 = arith.constant dense<0.000000e+00> : vector<2x128xf32>
    %364 = tpu.matmul %363, %362, %cst_135 {dimension_numbers = #tpu.dot_dimension_numbers<[1], [0], [0], [1], [0, 0, 1, 1], [], []>} : vector<2x32xbf16>, vector<32x128xbf16>, vector<2x128xf32> -> vector<2x128xf32>
    %c0_136 = arith.constant 0 : index
    %c0_137 = arith.constant 0 : index
    %365 = vector.load %arg13[%c0_136, %c0_137] : memref<1x128xf32, #tpu.memory_space<vmem>>, vector<1x128xf32>
    %366 = vector.broadcast %365 : vector<1x128xf32> to vector<2x128xf32>
    %367 = arith.addf %364, %366 : vector<2x128xf32>
    %c0_138 = arith.constant 0 : index
    %c0_139 = arith.constant 0 : index
    %368 = vector.load %arg14[%c0_138, %c0_139] : memref<2x128xf32, #tpu.memory_space<vmem>>, vector<2x128xf32>
    tpu.vector_store %arg14[%c0_138, %c0_139], %367 {strides = array<i32>} : memref<2x128xf32, #tpu.memory_space<vmem>>, vector<2x128xf32>,
    return
  }
}

</mosaic_0001>

<bundles_post_ra>
// kernel: vit_classifier_forward.1
= control target key start
LH: loop header
LB: loop body
LE: loop exit
PB: predicated region body
PF: predicated region fallthrough
CT: control target
= control target key end

     0   :  { %v2864_v1 = vmov 0   ;;  %vm160_vm0 = vcmask 523264   ;;  %s3536_s0 = inlined_call_operand.vmem [shape: bf16[10,192], index: 0, kind: input, shape index: {}]   ;;  %s3537_s1 = inlined_call_operand.vmem [shape: f32[10,32], index: 1, kind: input, shape index: {}]   ;;  %s3538_s2 = inlined_call_operand.vmem [shape: f32[10,10], index: 2, kind: input, shape index: {}]   ;;  %s3539_s3 = inlined_call_operand.vmem [shape: bf16[192,32], index: 3, kind: input, shape index: {}]   ;;  %s3540_s4 = inlined_call_operand.vmem [shape: f32[2,6,32], index: 4, kind: input, shape index: {}]   ;;  %s3541_s5 = inlined_call_operand.vmem [shape: bf16[2,32,768], index: 5, kind: input, shape index: {}]   ;;  %s3542_s6 = inlined_call_operand.vmem [shape: f32[2,1,768], index: 6, kind: input, shape index: {}]   ;;  %s3543_s7 = inlined_call_operand.vmem [shape: bf16[2,256,32], index: 7, kind: input, shape index: {}]   ;;  %s3544_s8 = inlined_call_operand.vmem [shape: bf16[2,32,64], index: 8, kind: input, shape index: {}]   ;;  %s3545_s9 = inlined_call_operand.vmem [shape: f32[2,1,64], index: 9, kind: input, shape index: {}]   ;;  %s3546_s10 = inlined_call_operand.vmem [shape: bf16[2,64,32], index: 10, kind: input, shape index: {}]   ;;  %s3547_s11 = inlined_call_operand.vmem [shape: f32[2,32], index: 11, kind: input, shape index: {}]   ;;  %s3548_s12 = inlined_call_operand.vmem [shape: bf16[32,128], index: 12, kind: input, shape index: {}]   ;;  %s3549_s13 = inlined_call_operand.vmem [shape: f32[1,128], index: 13, kind: input, shape index: {}]   ;;  %s3550_s14 = inlined_call_operand.hbm [shape: f32[2,128], index: 14, kind: output, shape index: {}]  }
   0x1   :  { %v2677_v0 = vld [vmem:[%s3539_s3] sm:$0xff]   ;;  %164 = vmatprep.subr.bf16.mxu0 %v2864_v1  ;;  %387 = vmatprep.mubr.bf16.mxu1 %v2864_v1  ;;  %v2678_v2 = vld [vmem:[%s3539_s3 + $0x8] sm:$0xff]   ;;  %v2679_v3 = vld [vmem:[%s3539_s3 + $0x10] sm:$0xff]  }
   0x2   :  { %165 = vmatpush1.bf16.msra.mxu0 %v2677_v0  ;;  %v2680_v4 = vld [vmem:[%s3539_s3 + $0x18] sm:$0xff]   ;;  %v2681_v5 = vld [vmem:[%s3539_s3 + $0x20] sm:$0xff]   ;;  %v2682_v7 = vld [vmem:[%s3539_s3 + $0x28] sm:$0xff]  }
   0x3   :  { %166 = vmatprep.subr.bf16.mxu0 %v2864_v1  ;;  %v2691_v6 = vld [vmem:[%s3536_s0 + $0x4] ss:$8 sps:$4 sm:$0x1f]   ;;  %v2683_v8 = vld [vmem:[%s3539_s3 + $0x30] sm:$0xff]   ;;  %v2684_v9 = vld [vmem:[%s3539_s3 + $0x38] sm:$0xff]  }
   0x4   :  { %2278 = vmatprep.mubr.msk.bf16.mxu0 %vm160_vm0, %v2691_v6  ;;  %v2685_v10 = vld [vmem:[%s3539_s3 + $0x40] sm:$0xff]   ;;  %v2686_v11 = vld [vmem:[%s3539_s3 + $0x48] sm:$0xff]   ;;  %v2687_v12 = vld [vmem:[%s3539_s3 + $0x50] sm:$0xff]  }
   0x5   :  { %v2688_v13 = vld [vmem:[%s3539_s3 + $0x58] sm:$0xff]   ;;  %v2689_v14 = vld [vmem:[%s3536_s0] ss:$8 sps:$4 sm:$0x1f]  }
   0x6   :  { %167 = vmatpush1.bf16.msra.mxu0 %v2678_v2 }
   0x7   :  { %168 = vmatprep.subr.bf16.mxu0 %v2864_v1 }
   0xa   :  { %169 = vmatpush1.bf16.msra.mxu0 %v2679_v3 }
   0xb   :  { %170 = vmatprep.subr.bf16.mxu0 %v2864_v1 }
   0xe   :  { %171 = vmatpush1.bf16.msra.mxu0 %v2680_v4 }
   0xf   :  { %172 = vmatprep.subr.bf16.mxu0 %v2864_v1 }
  0x12   :  { %173 = vmatpush1.bf16.msra.mxu0 %v2681_v5 }
  0x13   :  { %174 = vmatprep.subr.bf16.mxu0 %v2864_v1 }
  0x16   :  { %175 = vmatpush1.bf16.msra.mxu0 %v2682_v7 }
  0x17   :  { %176 = vmatprep.subr.bf16.mxu0 %v2864_v1 }
  0x1a   :  { %177 = vmatpush1.bf16.msra.mxu0 %v2683_v8 }
  0x1b   :  { %178 = vmatprep.subr.bf16.mxu0 %v2864_v1 }
  0x1e   :  { %179 = vmatpush1.bf16.msra.mxu0 %v2684_v9 }
  0x1f   :  { %180 = vmatprep.subr.bf16.mxu0 %v2864_v1 }
  0x22   :  { %181 = vmatpush1.bf16.msra.mxu0 %v2685_v10 }
  0x23   :  { %182 = vmatprep.subr.bf16.mxu0 %v2864_v1 }
  0x26   :  { %183 = vmatpush1.bf16.msra.mxu0 %v2686_v11 }
  0x27   :  { %184 = vmatprep.subr.bf16.mxu0 %v2864_v1 }
  0x2a   :  { %185 = vmatpush1.bf16.msra.mxu0 %v2687_v12 }
  0x2b   :  { %186 = vmatprep.subr.bf16.mxu0 %v2864_v1 }
  0x2e   :  { %187 = vmatpush1.bf16.msra.mxu0 %v2688_v13 }
  0x31   :  { %197 = vmatmul.mubr.bf16.vlgmr.msra.gmra.mrb[0].mxu0 %v2689_v14 }
  0x32   :  { %19 = vsyncpa [#allocation3], 0  ;;  %v77_v15 = vld [vmem:[%s3537_s1] sm:$0xff]  ;;  %v78_v17 = vld [vmem:[%s3537_s1 + $0x8] sm:$0x3]  ;;  %vm206_vm1 = vcmask 261120   ;;  %v235_v44 = vlaneseq }
  0x33   :  { %vm210_vm2 = vcmask 254976   ;;  %v2692_v35 = vld [vmem:[%s3541_s5 + $0x4] ss:$24 sps:$4 sm:$0xff]   ;;  %v2694_v36 = vld [vmem:[%s3541_s5] ss:$24 sps:$4 sm:$0xff]   ;;  %v2865_v6 = vmov 0.0  }
  0x34   :  { %355 = vmatprep.subr.bf16.mxu1 %v2692_v35  ;;  %v2695_v37 = vld [vmem:[%s3541_s5 + $0x34] ss:$24 sps:$4 sm:$0xff]   ;;  %v2697_v38 = vld [vmem:[%s3541_s5 + $0x30] ss:$24 sps:$4 sm:$0xff]   ;;  %v3032_v47 = vshrl.u32 %v235_v44, 7  ;;  %2515 = vmatprep.subr.bf16.mxu0 %v2865_v6  ;;  %vm2866_vm3 = vmmov 0  }
  0x35   :  { %356 = vmatpush1.bf16.msra.mxu1 %v2694_v36  ;;  %v2700_v39 = vld [vmem:[%s3541_s5 + $0xc] ss:$24 sps:$4 sm:$0xff]   ;;  %v2698_v61 = vld [vmem:[%s3541_s5 + $0x8] ss:$24 sps:$4 sm:$0xff]   ;;  %v2703_v63 = vld [vmem:[%s3541_s5 + $0x3c] ss:$24 sps:$4 sm:$0xff]   ;;  %2517 = vmatprep.mubr.msk.bf16.mxu0 %vm2866_vm3, %v2865_v6 }
  0x36   :  { %357 = vmatprep.subr.bf16.mxu1 %v2695_v37  ;;  %v3035_v48 = vsub.s32 0, %v3032_v47  ;;  %v3040_v49 = vld [vmem:[%s3540_s4] sm:$0x3f]  ;;  %v3045_v53 = vsub.s32 1, %v3032_v47  ;;  %v2701_v0 = vld [vmem:[%s3541_s5 + $0x38] ss:$24 sps:$4 sm:$0xff]  }
  0x37   :  { %v2706_v2 = vld [vmem:[%s3541_s5 + $0x14] ss:$24 sps:$4 sm:$0xff]   ;;  %v2704_v3 = vld [vmem:[%s3541_s5 + $0x10] ss:$24 sps:$4 sm:$0xff]   ;;  %v2709_v4 = vld [vmem:[%s3541_s5 + $0x44] ss:$24 sps:$4 sm:$0xff]  }
  0x38   :  { %v238_v52 = vrot.slane %v3040_v49, %v3035_v48  ;;  %v244_v57 = vrot.slane %v3040_v49, %v3045_v53  ;;  %v2707_v5 = vld [vmem:[%s3541_s5 + $0x40] ss:$24 sps:$4 sm:$0xff]   ;;  %vm588_vm4 = vcmask 1044480   ;;  %v3103_v35 = vsub.s32 5, %v3032_v47  ;;  %s2867_s17 = smov [#allocation2]  }
  0x39   :  { %358 = vmatpush1.bf16.msra.mxu1 %v2697_v38  ;;  %v260_v7 = vld [vmem:[%s3542_s6] sm:$0x3f]  ;;  %vm559_vm5 = vcmask 80896   ;;  %vm563_vm6 = vcmask 74752   ;;  %vm2156_vm11 = vcmask 1040384   ;;  %s2256_s18 = sshll.u32 %s2867_s17, 4  ;;  %s2257_s18 = int_to_ptr.vmem [resolvable:$true] %s2256_s18 }
  0x3a   :  { %398 = vmatprep.subr.bf16.mxu1 %v2700_v39  ;;  %v265_v8 = vrot.slane %v260_v7, %v3035_v48  ;;  %v269_v10 = vrot.slane %v260_v7, %v3045_v53  ;;  %p2845_p1 = scmp.lt.s32.totalorder %s2257_s18, %s2257_s18 }
 0x104   :  { %v198_v16 = vpop.f32.mrb[0].mxu0 }
 0x105   :  { %v3005_v18 = vadd.f32 %v198_v16, %v77_v15  ;;  %v200_v19 = vpop.f32.mrb[1].mxu0  ;;  %v3087_v16 = vsub.s32 2, %v3032_v47 }
 0x106   :  { %v201_v20 = vpop.f32.mrb[2].mxu0 }
 0x107   :  { %v3007_v21 = vadd.f32 %v201_v20, %v78_v17  ;;  %v203_v22 = vpop.f32.mrb[3].mxu0  ;;  %v207_v23 = vsel %vm206_vm1, %v3005_v18, 0.0  ;;  %v3090_v20 = vsub.s32 3, %v3032_v47 }
 0x108   :  { %208 = vadd.xlane.f32.xlu0 %v207_v23 }
 0x109   :  { %v211_v24 = vsel %vm210_vm2, %v3007_v21, 0.0 }
 0x10c   :  { %212 = vadd.xlane.f32.xlu0 %v211_v24  ;;  %v273_v24 = vrot.slane %v260_v7, %v3087_v16 }
 0x195   :  { %v209_v25 = vpop.xlane.xlu0 %208 }
 0x196   :  { %v215_v26 = vmul.f32 0.03125, %v209_v25 }
 0x198   :  { %v217_v27 = vsub.f32 %v3005_v18, %v215_v26  ;;  %v277_v26 = vrot.slane %v260_v7, %v3090_v20 }
 0x199   :  { %v213_v28 = vpop.xlane.xlu0 %212 }
 0x19a   :  { %v216_v29 = vmul.f32 0.03125, %v213_v28  ;;  %v219_v30 = vmul.f32 %v217_v27, %v217_v27 }
 0x19c   :  { %v218_v31 = vsub.f32 %v3007_v21, %v216_v29  ;;  %v221_v32 = vsel %vm206_vm1, %v219_v30, 0.0 }
 0x19d   :  { %222 = vadd.xlane.f32.xlu1 %v221_v32  ;;  %v3096_v32 = vsub.s32 4, %v3032_v47 }
 0x19e   :  { %v220_v33 = vmul.f32 %v218_v31, %v218_v31 }
 0x19f   :  { %v281_v38 = vrot.slane %v260_v7, %v3096_v32 }
 0x1a0   :  { %v224_v34 = vsel %vm210_vm2, %v220_v33, 0.0 }
 0x1a1   :  { %225 = vadd.xlane.f32.xlu1 %v224_v34 }
 0x22a   :  { %v223_v40 = vpop.xlane.xlu1 %222 }
 0x22b   :  { %v227_v41 = vmul.f32 0.03125, %v223_v40 }
 0x22d   :  { %v229_v42 = vadd.f32 1e-12, %v227_v41  ;;  %v285_v41 = vrot.slane %v260_v7, %v3103_v35 }
 0x22e   :  { %v226_v43 = vpop.xlane.xlu1 %225 }
 0x22f   :  { %2774 = vrsqrt.f32 %v229_v42  ;;  %v228_v45 = vmul.f32 0.03125, %v226_v43 }
 0x231   :  { %v230_v46 = vadd.f32 1e-12, %v228_v45 }
 0x233   :  { %2776 = vrsqrt.f32 %v230_v46 }
 0x239   :  { %v2775_v50 = vpop.eup %2774 }
 0x23a   :  { %v233_v51 = vmul.f32 %v2775_v50, %v217_v27 }
 0x23c   :  { %v239_v56 = vmul.f32 %v238_v52, %v233_v51 }
 0x23d   :  { %v2777_v54 = vpop.eup %2776 }
 0x23e   :  { %v234_v55 = vmul.f32 %v2777_v54, %v218_v31  ;;  %v245_v59 = vadd.f32 %v244_v57, %v239_v56 }
 0x240   :  { %v240_v58 = vmul.f32 %v238_v52, %v234_v55  ;;  %v3118_v55 = vld [vmem:[%s3538_s2] sm:$0xff] }
 0x242   :  { %v246_v60 = vadd.f32 %v244_v57, %v240_v58  ;;  %v3123_v57 = vld [vmem:[%s3538_s2 + $0x8] sm:$0x3] }
 0x244   :  { %v259_v62 = vpack.c.bf16 %v246_v60, %v245_v59 }
 0x246   :  { %2291 = vmatmul.mubr.msk.bf16.vlgmr.msra.gmra.mrb[0].mxu1 %vm206_vm1, %v259_v62 }
 0x247   :  { %399 = vmatpush1.bf16.msra.mxu1 %v2698_v61  ;;  %430 = vmatprep.mubr.bf16.mxu1 %v2864_v1 }
 0x248   :  { %400 = vmatprep.subr.bf16.mxu1 %v2703_v63 }
 0x24b   :  { %401 = vmatpush1.bf16.msra.mxu1 %v2701_v0 }
 0x24c   :  { %441 = vmatprep.subr.bf16.mxu1 %v2706_v2 }
 0x24e   :  { %2292 = vmatmul.mubr.msk.bf16.vlgmr.msra.gmra.mrb[4].mxu1 %vm206_vm1, %v259_v62 }
 0x24f   :  { %442 = vmatpush1.bf16.msra.mxu1 %v2704_v3  ;;  %473 = vmatprep.mubr.bf16.mxu1 %v2864_v1 }
 0x250   :  { %443 = vmatprep.subr.bf16.mxu1 %v2709_v4 }
 0x253   :  { %444 = vmatpush1.bf16.msra.mxu1 %v2707_v5 }
 0x254   :  { %2497 = vmatprep.subr.bf16.mxu1 %v2865_v6 }
 0x256   :  { %2293 = vmatmul.mubr.msk.bf16.vlgmr.msra.gmra.mrb[8].mxu1 %vm206_vm1, %v259_v62 }
 0x257   :  { %2499 = vmatprep.mubr.msk.bf16.mxu1 %vm2866_vm3, %v2865_v6 }
 0x319   :  { %v389_v9 = vpop.f32.mrb[0].mxu1 }
 0x31a   :  { %v391_v11 = vpop.f32.mrb[1].mxu1  ;;  %v390_v13 = vadd.f32 %v389_v9, %v265_v8 }
 0x31b   :  { %v393_v12 = vpop.f32.mrb[2].mxu1  ;;  %v392_v17 = vadd.f32 %v391_v11, %v269_v10 }
 0x31c   :  { %v394_v14 = vadd.f32 %v393_v12, %v265_v8  ;;  %v395_v15 = vpop.f32.mrb[3].mxu1 }
 0x31d   :  { %v396_v19 = vadd.f32 %v395_v15, %v269_v10 }
 0x31e   :  { %v516_v22 = vpack.c.bf16 %v394_v14, %v390_v13 }
 0x31f   :  { %v517_v23 = vpack.c.bf16 %v396_v19, %v392_v17 }
 0x321   :  { %v432_v25 = vpop.f32.mrb[4].mxu1  ;;  %2498 = vmatpush3.bf16.xpose.msra.mxu1 %v517_v23 }
 0x322   :  { %v434_v27 = vpop.f32.mrb[5].mxu1  ;;  %2503 = vmatprep.subr.bf16.mxu1 %v2865_v6  ;;  %v433_v29 = vadd.f32 %v432_v25, %v273_v24 }
 0x323   :  { %v436_v28 = vpop.f32.mrb[6].mxu1  ;;  %v3098_v33 = vadd.f32 %v434_v27, %v277_v26 }
 0x324   :  { %v437_v30 = vadd.f32 %v436_v28, %v273_v24  ;;  %v438_v31 = vpop.f32.mrb[7].mxu1 }
 0x325   :  { %v3100_v34 = vadd.f32 %v438_v31, %v277_v26 }
 0x326   :  { %v584_v36 = vpack.c.bf16 %v437_v30, %v433_v29 }
 0x327   :  { %v634_v37 = vpack.c.bf16 %v3100_v34, %v3098_v33 }
 0x328   :  { %2500 = vmatmul.mubr.bf16.vlgmr.msra.gmra.mrb[12].mxu1 %v516_v22  ;;  %v590_v39 = vsel %vm588_vm4, %v584_v36, 0 }
 0x329   :  { %v475_v40 = vpop.f32.mrb[8].mxu1  ;;  %2504 = vmatpush3.bf16.msra.mxu1 %v590_v39  ;;  %2505 = vmatprep.mubr.msk.bf16.mxu1 %vm2866_vm3, %v2865_v6 }
 0x32a   :  { %v477_v42 = vpop.f32.mrb[9].mxu1  ;;  %2509 = vmatprep.subr.bf16.mxu1 %v2865_v6  ;;  %v476_v44 = vadd.f32 %v475_v40, %v281_v38 }
 0x32b   :  { %v479_v43 = vpop.f32.mrb[10].mxu1  ;;  %v478_v47 = vadd.f32 %v477_v42, %v285_v41 }
 0x32c   :  { %v480_v45 = vadd.f32 %v479_v43, %v281_v38  ;;  %v481_v46 = vpop.f32.mrb[11].mxu1 }
 0x32d   :  { %v482_v50 = vadd.f32 %v481_v46, %v285_v41 }
 0x32e   :  { %v635_v51 = vpack.c.bf16 %v480_v45, %v476_v44 }
 0x32f   :  { %v700_v52 = vpack.c.bf16 %v482_v50, %v478_v47 }
 0x331   :  { %v705_v54 = vsel %vm588_vm4, %v700_v52, 0  ;;  %v2719_v52 = vld [vmem:[%s3543_s7 + $0x48] sm:$0xff]  }
 0x332   :  { %2516 = vmatpush3.bf16.msra.mxu0 %v705_v54  ;;  %v2720_v54 = vld [vmem:[%s3543_s7 + $0x50] sm:$0xff]  }
 0x333   :  { %2541 = vmatprep.subr.bf16.mxu0 %v2865_v6 }
 0x3fb   :  { %v552_v56 = vpop.f32.mrb[12].mxu1 }
 0x3fc   :  { %v553_v58 = vadd.f32 %v552_v56, %v3118_v55  ;;  %v2501_v59 = vpop.f32.mrb[13].mxu1  ;;  %v2721_v56 = vld [vmem:[%s3543_s7 + $0x58] sm:$0xff]  }
 0x3fd   :  { %v555_v60 = vpop.f32.mrb[14].mxu1  ;;  %v2723_v59 = vld [vmem:[%s3543_s7 + $0x68] sm:$0xff]  }
 0x3fe   :  { %v556_v61 = vadd.f32 %v555_v60, %v3123_v57  ;;  %v2502_v62 = vpop.f32.mrb[15].mxu1  ;;  %v560_v63 = vsel %vm559_vm5, %v553_v58, -inf  ;;  %v2724_v60 = vld [vmem:[%s3543_s7 + $0x70] sm:$0xff]  }
 0x3ff   :  { %561 = vmax.xlane.f32.xlu0 %v560_v63 }
 0x400   :  { %v564_v0 = vsel %vm563_vm6, %v556_v61, -inf }
 0x401   :  { %565 = vmax.xlane.f32.xlu1 %v564_v0 }
 0x48c   :  { %v562_v2 = vpop.xlane.xlu0 %561 }
 0x48d   :  { %v567_v3 = vsub.f32 %v553_v58, %v562_v2  ;;  %v2722_v58 = vld [vmem:[%s3543_s7 + $0x60] sm:$0xff]  }
 0x48e   :  { %v566_v4 = vpop.xlane.xlu1 %565 }
 0x48f   :  { %v569_v5 = vmul.f32 1.442695, %v567_v3  ;;  %v568_v7 = vsub.f32 %v556_v61, %v566_v4  ;;  %v2710_v4 = vld [vmem:[%s3543_s7] sm:$0xff]  }
 0x491   :  { %2778 = vpow2.f32 %v569_v5  ;;  %v571_v8 = vmul.f32 1.442695, %v568_v7  ;;  %v2711_v7 = vld [vmem:[%s3543_s7 + $0x8] sm:$0xff]  }
 0x493   :  { %2780 = vpow2.f32 %v571_v8  ;;  %v2712_v8 = vld [vmem:[%s3543_s7 + $0x10] sm:$0xff]  }
 0x49b   :  { %v2779_v9 = vpop.eup %2778 }
 0x49c   :  { %v573_v10 = vsel %vm559_vm5, %v2779_v9, 0.0 }
 0x49d   :  { %v2781_v11 = vpop.eup %2780  ;;  %574 = vadd.xlane.f32.xlu0 %v573_v10  ;;  %v2714_v10 = vld [vmem:[%s3543_s7 + $0x20] sm:$0xff]  }
 0x49e   :  { %v576_v12 = vsel %vm563_vm6, %v2781_v11, 0.0 }
 0x49f   :  { %577 = vadd.xlane.f32.xlu1 %v576_v12  ;;  %v2716_v12 = vld [vmem:[%s3543_s7 + $0x30] sm:$0xff]  }
 0x52a   :  { %v575_v13 = vpop.xlane.xlu0 %574 }
 0x52b   :  { %2782 = vrcp.f32 %v575_v13  ;;  %v2717_v13 = vld [vmem:[%s3543_s7 + $0x38] sm:$0xff]  }
 0x52c   :  { %v578_v14 = vpop.xlane.xlu1 %577 }
 0x52d   :  { %2784 = vrcp.f32 %v578_v14  ;;  %v2725_v14 = vld [vmem:[%s3543_s7 + $0x78] sm:$0xff]  }
 0x535   :  { %v2783_v15 = vpop.eup %2782 }
 0x536   :  { %v581_v19 = vmul.f32 %v2783_v15, %v2779_v9  ;;  %v2713_v9 = vld [vmem:[%s3543_s7 + $0x18] sm:$0xff]  }
 0x537   :  { %v2785_v17 = vpop.eup %2784 }
 0x538   :  { %v582_v22 = vmul.f32 %v2785_v17, %v2781_v11  ;;  %v2715_v11 = vld [vmem:[%s3543_s7 + $0x28] sm:$0xff]  }
 0x53a   :  { %v583_v23 = vpack.c.bf16 %v582_v22, %v581_v19 }
 0x53c   :  { %2506 = vmatmul.mubr.msk.bf16.vlgmr.msra.gmra.mrb[16].mxu1 %vm559_vm5, %v583_v23 }
 0x53d   :  { %2510 = vmatpush3.bf16.xpose.msra.mxu1 %v635_v51  ;;  %2511 = vmatprep.mubr.msk.bf16.mxu1 %vm2866_vm3, %v2865_v6  ;;  %v2718_v51 = vld [vmem:[%s3543_s7 + $0x40] sm:$0xff]  }
 0x53e   :  { %2521 = vmatprep.subr.bf16.mxu1 %v2865_v6 }
 0x544   :  { %2512 = vmatmul.mubr.bf16.vlgmr.msra.gmra.mrb[20].mxu1 %v634_v37 }
 0x545   :  { %2537 = vmatprep.mubr.msk.bf16.mxu1 %vm2866_vm3, %v2865_v6  ;;  %2522 = vmatpush3.bf16.msra.mxu1 %v2718_v51 }
 0x546   :  { %2523 = vmatprep.subr.bf16.mxu1 %v2865_v6 }
 0x549   :  { %2524 = vmatpush3.bf16.msra.mxu1 %v2719_v52 }
 0x54a   :  { %2525 = vmatprep.subr.bf16.mxu1 %v2865_v6 }
 0x54d   :  { %2526 = vmatpush3.bf16.msra.mxu1 %v2720_v54  ;;  %v2726_v54 = vld [vmem:[%s3544_s8] sm:$0xff]  }
 0x54e   :  { %2527 = vmatprep.subr.bf16.mxu1 %v2865_v6 }
 0x551   :  { %2528 = vmatpush3.bf16.msra.mxu1 %v2721_v56  ;;  %v2727_v56 = vld [vmem:[%s3544_s8 + $0x8] sm:$0xff]  }
 0x552   :  { %2529 = vmatprep.subr.bf16.mxu1 %v2865_v6 }
 0x555   :  { %2530 = vmatpush3.bf16.msra.mxu1 %v2722_v58 }
 0x556   :  { %2531 = vmatprep.subr.bf16.mxu1 %v2865_v6 }
 0x559   :  { %2532 = vmatpush3.bf16.msra.mxu1 %v2723_v59 }
 0x55a   :  { %2533 = vmatprep.subr.bf16.mxu1 %v2865_v6 }
 0x55d   :  { %2534 = vmatpush3.bf16.msra.mxu1 %v2724_v60 }
 0x55e   :  { %2535 = vmatprep.subr.bf16.mxu1 %v2865_v6 }
 0x561   :  { %2536 = vmatpush3.bf16.msra.mxu1 %v2725_v14  ;;  %v2729_v14 = vld [vmem:[%s3546_s10 + $0x8] sm:$0xff]  }
 0x562   :  { %2561 = vmatprep.subr.bf16.mxu1 %v2865_v6 }
 0x60f   :  { %v3137_v24 = vpop.f32.mrb[16].mxu1 }
 0x610   :  { %v2507_v25 = vpop.f32.mrb[17].mxu1 }
 0x611   :  { %v3139_v26 = vpop.f32.mrb[18].mxu1 }
 0x612   :  { %v633_v27 = vpack.c.bf16 %v3139_v26, %v3137_v24  ;;  %v2508_v28 = vpop.f32.mrb[19].mxu1 }
 0x617   :  { %v670_v29 = vpop.f32.mrb[20].mxu1 }
 0x618   :  { %v671_v30 = vadd.f32 %v670_v29, %v3118_v55  ;;  %v2513_v31 = vpop.f32.mrb[21].mxu1 }
 0x619   :  { %v673_v33 = vpop.f32.mrb[22].mxu1 }
 0x61a   :  { %v674_v34 = vadd.f32 %v673_v33, %v3123_v57  ;;  %v2514_v36 = vpop.f32.mrb[23].mxu1  ;;  %v677_v37 = vsel %vm559_vm5, %v671_v30, -inf }
 0x61b   :  { %678 = vmax.xlane.f32.xlu0 %v677_v37 }
 0x61c   :  { %v680_v38 = vsel %vm563_vm6, %v674_v34, -inf }
 0x61d   :  { %681 = vmax.xlane.f32.xlu1 %v680_v38 }
 0x6a8   :  { %v679_v39 = vpop.xlane.xlu0 %678 }
 0x6a9   :  { %v683_v40 = vsub.f32 %v671_v30, %v679_v39  ;;  %v932_v30 = vrot.slane %v3040_v49, %v3087_v16 }
 0x6aa   :  { %v682_v41 = vpop.xlane.xlu1 %681 }
 0x6ab   :  { %v685_v42 = vmul.f32 1.442695, %v683_v40  ;;  %v684_v43 = vsub.f32 %v674_v34, %v682_v41 }
 0x6ad   :  { %2786 = vpow2.f32 %v685_v42  ;;  %v687_v44 = vmul.f32 1.442695, %v684_v43 }
 0x6af   :  { %2788 = vpow2.f32 %v687_v44 }
 0x6b7   :  { %v2787_v45 = vpop.eup %2786 }
 0x6b8   :  { %v689_v46 = vsel %vm559_vm5, %v2787_v45, 0.0 }
 0x6b9   :  { %v2789_v47 = vpop.eup %2788  ;;  %690 = vadd.xlane.f32.xlu0 %v689_v46 }
 0x6ba   :  { %v692_v50 = vsel %vm563_vm6, %v2789_v47, 0.0 }
 0x6bb   :  { %693 = vadd.xlane.f32.xlu1 %v692_v50 }
 0x746   :  { %v691_v61 = vpop.xlane.xlu0 %690 }
 0x747   :  { %2790 = vrcp.f32 %v691_v61 }
 0x748   :  { %v694_v62 = vpop.xlane.xlu1 %693 }
 0x749   :  { %2792 = vrcp.f32 %v694_v62 }
 0x751   :  { %v2791_v63 = vpop.eup %2790 }
 0x752   :  { %v697_v2 = vmul.f32 %v2791_v63, %v2787_v45 }
 0x753   :  { %v2793_v0 = vpop.eup %2792 }
 0x754   :  { %v698_v3 = vmul.f32 %v2793_v0, %v2789_v47  ;;  %v964_v0 = vrot.slane %v3040_v49, %v3090_v20 }
 0x756   :  { %v699_v5 = vpack.c.bf16 %v698_v3, %v697_v2 }
 0x758   :  { %2518 = vmatmul.mubr.msk.bf16.vlgmr.msra.gmra.mrb[4].mxu0 %vm559_vm5, %v699_v5 }
 0x759   :  { %2542 = vmatpush3.bf16.msra.mxu0 %v2710_v4  ;;  %2557 = vmatprep.mubr.msk.bf16.mxu0 %vm2866_vm3, %v2865_v6 }
 0x75a   :  { %2543 = vmatprep.subr.bf16.mxu0 %v2865_v6 }
 0x75d   :  { %2544 = vmatpush3.bf16.msra.mxu0 %v2711_v7 }
 0x75e   :  { %2545 = vmatprep.subr.bf16.mxu0 %v2865_v6 }
 0x761   :  { %2546 = vmatpush3.bf16.msra.mxu0 %v2712_v8  ;;  %v970_v8 = vrot.slane %v3040_v49, %v3096_v32 }
 0x762   :  { %2547 = vmatprep.subr.bf16.mxu0 %v2865_v6 }
 0x765   :  { %2548 = vmatpush3.bf16.msra.mxu0 %v2713_v9 }
 0x766   :  { %2549 = vmatprep.subr.bf16.mxu0 %v2865_v6 }
 0x769   :  { %2550 = vmatpush3.bf16.msra.mxu0 %v2714_v10 }
 0x76a   :  { %2551 = vmatprep.subr.bf16.mxu0 %v2865_v6 }
 0x76d   :  { %2552 = vmatpush3.bf16.msra.mxu0 %v2715_v11 }
 0x76e   :  { %2553 = vmatprep.subr.bf16.mxu0 %v2865_v6 }
 0x771   :  { %2554 = vmatpush3.bf16.msra.mxu0 %v2716_v12 }
 0x772   :  { %2555 = vmatprep.subr.bf16.mxu0 %v2865_v6 }
 0x775   :  { %2556 = vmatpush3.bf16.msra.mxu0 %v2717_v13  ;;  %v2728_v13 = vld [vmem:[%s3546_s10] sm:$0xff]  }
 0x776   :  { %2569 = vmatprep.subr.bf16.mxu0 %v2865_v6 }
 0x778   :  { %2558 = vmatmul.mubr.bf16.vlgmr.msra.gmra.mrb[8].mxu0 %v633_v27 }
 0x779   :  { %2577 = vmatprep.mubr.msk.bf16.mxu0 %vm2866_vm3, %v2865_v6  ;;  %2570 = vmatpush3.bf16.msra.mxu0 %v2728_v13 }
 0x77a   :  { %2571 = vmatprep.subr.bf16.mxu0 %v2865_v6 }
 0x77d   :  { %2572 = vmatpush3.bf16.msra.mxu0 %v2729_v14 }
 0x77e   :  { %2573 = vmatprep.subr.bf16.mxu0 %v2865_v6 }
 0x82b   :  { %v741_v15 = vpop.f32.mrb[4].mxu0 }
 0x82c   :  { %v2519_v17 = vpop.f32.mrb[5].mxu0 }
 0x82d   :  { %v744_v19 = vpop.f32.mrb[6].mxu0  ;;  %v2731_v17 = vld [vmem:[%s3546_s10 + $0x18] sm:$0xff]  }
 0x82e   :  { %v748_v22 = vpack.c.bf16 %v744_v19, %v741_v15  ;;  %v2520_v23 = vpop.f32.mrb[7].mxu0  ;;  %v2730_v15 = vld [vmem:[%s3546_s10 + $0x10] sm:$0xff]   ;;  %v2312_v19 = vld [vmem:[%s3545_s9] ss:$0 sm:$0xff] }
 0x82f   :  { %2574 = vmatpush3.bf16.msra.mxu0 %v2730_v15 }
 0x830   :  { %2538 = vmatmul.mubr.bf16.vlgmr.msra.gmra.mrb[24].mxu1 %v748_v22  ;;  %2575 = vmatprep.subr.bf16.mxu0 %v2865_v6 }
 0x831   :  { %2565 = vmatprep.mubr.msk.bf16.mxu1 %vm2866_vm3, %v2865_v6  ;;  %2562 = vmatpush3.bf16.msra.mxu1 %v2726_v54 }
 0x832   :  { %2563 = vmatprep.subr.bf16.mxu1 %v2865_v6 }
 0x833   :  { %2576 = vmatpush3.bf16.msra.mxu0 %v2731_v17 }
 0x835   :  { %2564 = vmatpush3.bf16.msra.mxu1 %v2727_v56 }
 0x84b   :  { %v920_v24 = vpop.f32.mrb[8].mxu0 }
 0x84c   :  { %v2559_v25 = vpop.f32.mrb[9].mxu0 }
 0x84d   :  { %v923_v26 = vpop.f32.mrb[10].mxu0 }
 0x84e   :  { %v2560_v27 = vpop.f32.mrb[11].mxu0 }
 0x903   :  { %v831_v28 = vpop.f32.mrb[24].mxu1 }
 0x904   :  { %v921_v29 = vadd.f32 %v920_v24, %v831_v28  ;;  %v2539_v31 = vpop.f32.mrb[25].mxu1 }
 0x905   :  { %v834_v33 = vpop.f32.mrb[26].mxu1 }
 0x906   :  { %v927_v34 = vadd.f32 %v921_v29, %v3005_v18  ;;  %v924_v36 = vadd.f32 %v923_v26, %v834_v33  ;;  %v2540_v37 = vpop.f32.mrb[27].mxu1 }
 0x908   :  { %v3226_v38 = vadd.f32 %v932_v30, %v927_v34  ;;  %v928_v39 = vadd.f32 %v924_v36, %v3007_v21 }
 0x90a   :  { %v3229_v40 = vadd.f32 %v932_v30, %v928_v39  ;;  %v935_v41 = vsel %vm206_vm1, %v3226_v38, 0.0 }
 0x90b   :  { %936 = vadd.xlane.f32.xlu0 %v935_v41 }
 0x90c   :  { %v938_v42 = vsel %vm210_vm2, %v3229_v40, 0.0 }
 0x90d   :  { %939 = vadd.xlane.f32.xlu1 %v938_v42 }
 0x998   :  { %v937_v43 = vpop.xlane.xlu0 %936 }
 0x999   :  { %v941_v44 = vmul.f32 0.03125, %v937_v43 }
 0x99a   :  { %v940_v45 = vpop.xlane.xlu1 %939 }
 0x99b   :  { %v943_v18 = vsub.f32 %v3226_v38, %v941_v44  ;;  %v942_v46 = vmul.f32 0.03125, %v940_v45 }
 0x99d   :  { %v944_v47 = vsub.f32 %v3229_v40, %v942_v46  ;;  %v945_v50 = vmul.f32 %v943_v18, %v943_v18 }
 0x99f   :  { %v947_v21 = vsel %vm206_vm1, %v945_v50, 0.0  ;;  %v946_v51 = vmul.f32 %v944_v47, %v944_v47 }
 0x9a0   :  { %948 = vadd.xlane.f32.xlu0 %v947_v21 }
 0x9a1   :  { %v950_v52 = vsel %vm210_vm2, %v946_v51, 0.0 }
 0x9a2   :  { %951 = vadd.xlane.f32.xlu1 %v950_v52 }
 0xa2d   :  { %v949_v58 = vpop.xlane.xlu0 %948 }
 0xa2e   :  { %v953_v59 = vmul.f32 0.03125, %v949_v58 }
 0xa2f   :  { %v952_v60 = vpop.xlane.xlu1 %951 }
 0xa30   :  { %v955_v61 = vadd.f32 1e-12, %v953_v59  ;;  %v954_v62 = vmul.f32 0.03125, %v952_v60 }
 0xa32   :  { %2794 = vrsqrt.f32 %v955_v61  ;;  %v956_v63 = vadd.f32 1e-12, %v954_v62 }
 0xa34   :  { %2796 = vrsqrt.f32 %v956_v63 }
 0xa3c   :  { %v2795_v2 = vpop.eup %2794 }
 0xa3d   :  { %v959_v3 = vmul.f32 %v2795_v2, %v943_v18 }
 0xa3e   :  { %v2797_v4 = vpop.eup %2796 }
 0xa3f   :  { %v965_v5 = vmul.f32 %v964_v0, %v959_v3  ;;  %v960_v7 = vmul.f32 %v2797_v4, %v944_v47 }
 0xa41   :  { %v966_v9 = vmul.f32 %v964_v0, %v960_v7  ;;  %v971_v10 = vadd.f32 %v970_v8, %v965_v5 }
 0xa43   :  { %v972_v11 = vadd.f32 %v970_v8, %v966_v9 }
 0xa45   :  { %v977_v12 = vpack.c.bf16 %v972_v11, %v971_v10 }
 0xa47   :  { %2566 = vmatmul.mubr.msk.bf16.vlgmr.msra.gmra.mrb[28].mxu1 %vm206_vm1, %v977_v12 }
 0xa48   :  { %1362 = vmatprep.mubr.bf16.mxu1 %v2864_v1 }
 0xb1a   :  { %v1034_v22 = vpop.f32.mrb[28].mxu1 }
 0xb1b   :  { %v1035_v23 = vadd.f32 %v2312_v19, %v1034_v22  ;;  %v2567_v24 = vpop.f32.mrb[29].mxu1 }
 0xb1c   :  { %v1037_v25 = vpop.f32.mrb[30].mxu1 }
 0xb1d   :  { %v1043_v26 = vmul.f32 0.70710677, %v1035_v23  ;;  %v1038_v27 = vadd.f32 %v2312_v19, %v1037_v25  ;;  %v2568_v28 = vpop.f32.mrb[31].mxu1  ;;  %v1041_v22 = vmul.f32 0.5, %v1035_v23 }
 0xb1f   :  { %v1045_v29 = vand.u32 2147483647, %v1043_v26  ;;  %v1044_v30 = vmul.f32 0.70710677, %v1038_v27  ;;  %vm1085_vm7 = vcmp.ge.f32.partialorder %v1043_v26, 0.0  ;;  %v1042_v24 = vmul.f32 0.5, %v1038_v27 }
 0xb21   :  { %v1047_v31 = vmul.f32 0.3275911, %v1045_v29  ;;  %v1046_v33 = vand.u32 2147483647, %v1044_v30  ;;  %v1073_v39 = vsub.f32 0.0, %v1045_v29  ;;  %vm1086_vm8 = vcmp.ge.f32.partialorder %v1044_v30, 0.0 }
 0xb23   :  { %v1049_v34 = vadd.f32 1.0, %v1047_v31  ;;  %v1048_v36 = vmul.f32 0.3275911, %v1046_v33  ;;  %v1074_v41 = vsub.f32 0.0, %v1046_v33  ;;  %v1075_v43 = vmul.f32 %v1073_v39, %v1045_v29 }
 0xb25   :  { %2798 = vrcp.f32 %v1049_v34  ;;  %v1050_v37 = vadd.f32 1.0, %v1048_v36  ;;  %v1076_v46 = vmul.f32 %v1074_v41, %v1046_v33  ;;  %v1077_v47 = vmul.f32 1.442695, %v1075_v43 }
 0xb26   :  { %v1177_v33 = vrot.slane %v3040_v49, %v3103_v35 }
 0xb27   :  { %2800 = vrcp.f32 %v1050_v37  ;;  %v1079_v54 = vmul.f32 1.442695, %v1076_v46 }
 0xb28   :  { %2802 = vpow2.f32 %v1077_v47 }
 0xb29   :  { %2804 = vpow2.f32 %v1079_v54  ;;  %v2735_v54 = vld [vmem:[%s3541_s5 + $0x70] ss:$24 sps:$4 sm:$0xff]  }
 0xb2f   :  { %v2799_v42 = vpop.eup %2798 }
 0xb30   :  { %v1055_v44 = vmul.f32 1.0614054, %v2799_v42 }
 0xb31   :  { %v2801_v45 = vpop.eup %2800 }
 0xb32   :  { %v1057_v18 = vadd.f32 -1.4531521, %v1055_v44  ;;  %v1056_v50 = vmul.f32 1.0614054, %v2801_v45  ;;  %v2803_v4 = vpop.eup %2802 }
 0xb33   :  { %v2805_v9 = vpop.eup %2804 }
 0xb34   :  { %v1059_v21 = vmul.f32 %v2799_v42, %v1057_v18  ;;  %v1058_v51 = vadd.f32 -1.4531521, %v1056_v50 }
 0xb36   :  { %v1061_v52 = vadd.f32 1.4214138, %v1059_v21  ;;  %v1060_v56 = vmul.f32 %v2801_v45, %v1058_v51  ;;  %v2734_v21 = vld [vmem:[%s3541_s5 + $0x64] ss:$24 sps:$4 sm:$0xff]   ;;  %v2737_v51 = vld [vmem:[%s3541_s5 + $0x74] ss:$24 sps:$4 sm:$0xff]  }
 0xb37   :  { %1330 = vmatprep.subr.bf16.mxu1 %v2734_v21  ;;  %1416 = vmatprep.subr.bf16.mxu0 %v2737_v51 }
 0xb38   :  { %v1063_v58 = vmul.f32 %v2799_v42, %v1061_v52  ;;  %v1062_v59 = vadd.f32 1.4214138, %v1060_v56  ;;  %v2732_v52 = vld [vmem:[%s3541_s5 + $0x60] ss:$24 sps:$4 sm:$0xff]   ;;  %v2738_v56 = vld [vmem:[%s3541_s5 + $0x90] ss:$24 sps:$4 sm:$0xff]  }
 0xb39   :  { %1331 = vmatpush1.bf16.msra.mxu1 %v2732_v52 }
 0xb3a   :  { %v1065_v60 = vadd.f32 -0.28449672, %v1063_v58  ;;  %v1064_v61 = vmul.f32 %v2801_v45, %v1062_v59  ;;  %v2740_v58 = vld [vmem:[%s3541_s5 + $0x94] ss:$24 sps:$4 sm:$0xff]   ;;  %v2741_v59 = vld [vmem:[%s3541_s5 + $0xa0] ss:$24 sps:$4 sm:$0xff]  }
 0xb3b   :  { %1332 = vmatprep.subr.bf16.mxu1 %v2740_v58 }
 0xb3c   :  { %v1067_v62 = vmul.f32 %v2799_v42, %v1065_v60  ;;  %v1066_v63 = vadd.f32 -0.28449672, %v1064_v61  ;;  %v2743_v60 = vld [vmem:[%s3541_s5 + $0xa4] ss:$24 sps:$4 sm:$0xff]  }
 0xb3d   :  { %1333 = vmatpush1.bf16.msra.mxu1 %v2738_v56  ;;  %v2746_v61 = vld [vmem:[%s3541_s5 + $0x6c] ss:$24 sps:$4 sm:$0xff]  }
 0xb3e   :  { %v1069_v0 = vadd.f32 0.2548296, %v1067_v62  ;;  %v1068_v2 = vmul.f32 %v2801_v45, %v1066_v63  ;;  %1373 = vmatprep.subr.bf16.mxu1 %v2746_v61 }
 0xb40   :  { %v1071_v3 = vmul.f32 %v2799_v42, %v1069_v0  ;;  %v1070_v5 = vadd.f32 0.2548296, %v1068_v2 }
 0xb42   :  { %v1081_v7 = vmul.f32 %v2803_v4, %v1071_v3  ;;  %v1072_v8 = vmul.f32 %v2801_v45, %v1070_v5  ;;  %v3319_v5 = vld [vmem:[%s3540_s4 + $0x8] sm:$0x3f] }
 0xb44   :  { %v1083_v10 = vsub.f32 1.0, %v1081_v7  ;;  %v1082_v11 = vmul.f32 %v2805_v9, %v1072_v8  ;;  %v1211_v7 = vrot.slane %v3319_v5, %v3035_v48 }
 0xb46   :  { %v1087_v12 = vsub.f32 0.0, %v1083_v10  ;;  %v1084_v13 = vsub.f32 1.0, %v1082_v11 }
 0xb48   :  { %v1089_v14 = vsel %vm1085_vm7, %v1083_v10, %v1087_v12  ;;  %v1088_v15 = vsub.f32 0.0, %v1084_v13 }
 0xb49   :  { %v1091_v17 = vadd.f32 1.0, %v1089_v14 }
 0xb4a   :  { %v1090_v19 = vsel %vm1086_vm8, %v1084_v13, %v1088_v15  ;;  %v1217_v13 = vrot.slane %v3319_v5, %v3045_v53 }
 0xb4b   :  { %v1092_v25 = vadd.f32 1.0, %v1090_v19  ;;  %v1093_v28 = vmul.f32 %v1091_v17, %v1041_v22  ;;  %v2744_v19 = vld [vmem:[%s3541_s5 + $0x68] ss:$24 sps:$4 sm:$0xff]  }
 0xb4d   :  { %v1094_v29 = vmul.f32 %v1092_v25, %v1042_v24  ;;  %v2749_v24 = vld [vmem:[%s3541_s5 + $0x9c] ss:$24 sps:$4 sm:$0xff]   ;;  %v2747_v25 = vld [vmem:[%s3541_s5 + $0x98] ss:$24 sps:$4 sm:$0xff]  }
 0xb4f   :  { %v1103_v31 = vpack.c.bf16 %v1094_v29, %v1093_v28  ;;  %v2334_v28 = vld [vmem:[%s3542_s6 + $0x6] sm:$0x3f] }
 0xb50   :  { %v1240_v29 = vrot.slane %v2334_v28, %v3035_v48  ;;  %v1248_v52 = vrot.slane %v2334_v28, %v3087_v16  ;;  %v1252_v56 = vrot.slane %v2334_v28, %v3090_v20 }
 0xb51   :  { %2578 = vmatmul.mubr.msk.bf16.vlgmr.msra.gmra.mrb[12].mxu0 %vm160_vm0, %v1103_v31 }
 0xb52   :  { %1448 = vmatprep.mubr.bf16.mxu0 %v2864_v1  ;;  %1417 = vmatpush1.bf16.msra.mxu0 %v2735_v54 }
 0xb53   :  { %1418 = vmatprep.subr.bf16.mxu0 %v2743_v60 }
 0xb56   :  { %1419 = vmatpush1.bf16.msra.mxu0 %v2741_v59 }
 0xb57   :  { %2587 = vmatprep.subr.bf16.mxu0 %v2865_v6 }
 0xc24   :  { %v1165_v26 = vpop.f32.mrb[12].mxu0 }
 0xc25   :  { %v1172_v34 = vadd.f32 %v1165_v26, %v3226_v38  ;;  %v2579_v36 = vpop.f32.mrb[13].mxu0  ;;  %v1244_v26 = vrot.slane %v2334_v28, %v3045_v53 }
 0xc26   :  { %v1168_v37 = vpop.f32.mrb[14].mxu0 }
 0xc27   :  { %v3275_v30 = vadd.f32 %v1177_v33, %v1172_v34  ;;  %v1173_v23 = vadd.f32 %v1168_v37, %v3229_v40  ;;  %v2580_v27 = vpop.f32.mrb[15].mxu0  ;;  %v1260_v34 = vrot.slane %v2334_v28, %v3103_v35 }
 0xc29   :  { %v3278_v39 = vadd.f32 %v1177_v33, %v1173_v23  ;;  %v1182_v41 = vsel %vm206_vm1, %v3275_v30, 0.0 }
 0xc2a   :  { %1183 = vadd.xlane.f32.xlu0 %v1182_v41 }
 0xc2b   :  { %v1185_v42 = vsel %vm210_vm2, %v3278_v39, 0.0 }
 0xc2c   :  { %1186 = vadd.xlane.f32.xlu1 %v1185_v42 }
 0xcb7   :  { %v1184_v49 = vpop.xlane.xlu0 %1183 }
 0xcb8   :  { %v1188_v43 = vmul.f32 0.03125, %v1184_v49 }
 0xcb9   :  { %v1187_v38 = vpop.xlane.xlu1 %1186 }
 0xcba   :  { %v1190_v44 = vsub.f32 %v3275_v30, %v1188_v43  ;;  %v1189_v45 = vmul.f32 0.03125, %v1187_v38 }
 0xcbc   :  { %v1191_v18 = vsub.f32 %v3278_v39, %v1189_v45  ;;  %v1192_v40 = vmul.f32 %v1190_v44, %v1190_v44 }
 0xcbe   :  { %v1194_v46 = vsel %vm206_vm1, %v1192_v40, 0.0  ;;  %v1193_v47 = vmul.f32 %v1191_v18, %v1191_v18 }
 0xcbf   :  { %1195 = vadd.xlane.f32.xlu0 %v1194_v46 }
 0xcc0   :  { %v1197_v50 = vsel %vm210_vm2, %v1193_v47, 0.0 }
 0xcc1   :  { %1198 = vadd.xlane.f32.xlu1 %v1197_v50 }
 0xd4c   :  { %v1196_v62 = vpop.xlane.xlu0 %1195 }
 0xd4d   :  { %v1200_v63 = vmul.f32 0.03125, %v1196_v62 }
 0xd4e   :  { %v1199_v0 = vpop.xlane.xlu1 %1198 }
 0xd4f   :  { %v1202_v2 = vadd.f32 1e-12, %v1200_v63  ;;  %v1201_v3 = vmul.f32 0.03125, %v1199_v0 }
 0xd51   :  { %2806 = vrsqrt.f32 %v1202_v2  ;;  %v1203_v4 = vadd.f32 1e-12, %v1201_v3 }
 0xd53   :  { %2808 = vrsqrt.f32 %v1203_v4 }
 0xd5b   :  { %v2807_v8 = vpop.eup %2806 }
 0xd5c   :  { %v1206_v9 = vmul.f32 %v2807_v8, %v1190_v44 }
 0xd5d   :  { %v2809_v10 = vpop.eup %2808 }
 0xd5e   :  { %v1212_v11 = vmul.f32 %v1211_v7, %v1206_v9  ;;  %v1207_v12 = vmul.f32 %v2809_v10, %v1191_v18 }
 0xd60   :  { %v1213_v14 = vmul.f32 %v1211_v7, %v1207_v12  ;;  %v1218_v15 = vadd.f32 %v1217_v13, %v1212_v11 }
 0xd62   :  { %v1219_v17 = vadd.f32 %v1217_v13, %v1213_v14 }
 0xd64   :  { %v1233_v22 = vpack.c.bf16 %v1219_v17, %v1218_v15 }
 0xd66   :  { %2347 = vmatmul.mubr.msk.bf16.vlgmr.msra.gmra.mrb[32].mxu1 %vm206_vm1, %v1233_v22  ;;  %2349 = vmatmul.mubr.msk.bf16.vlgmr.msra.gmra.mrb[16].mxu0 %vm206_vm1, %v1233_v22 }
 0xd67   :  { %1374 = vmatpush1.bf16.msra.mxu1 %v2744_v19  ;;  %1405 = vmatprep.mubr.bf16.mxu1 %v2864_v1  ;;  %v1256_v1 = vrot.slane %v2334_v28, %v3096_v32 }
 0xd68   :  { %1375 = vmatprep.subr.bf16.mxu1 %v2749_v24  ;;  %2589 = vmatprep.mubr.msk.bf16.mxu0 %vm2866_vm3, %v2865_v6 }
 0xd6b   :  { %1376 = vmatpush1.bf16.msra.mxu1 %v2747_v25 }
 0xd6c   :  { %2581 = vmatprep.subr.bf16.mxu1 %v2865_v6 }
 0xd6e   :  { %2348 = vmatmul.mubr.msk.bf16.vlgmr.msra.gmra.mrb[36].mxu1 %vm206_vm1, %v1233_v22 }
 0xd6f   :  { %2583 = vmatprep.mubr.msk.bf16.mxu1 %vm2866_vm3, %v2865_v6 }
 0xe39   :  { %v1364_v31 = vpop.f32.mrb[32].mxu1  ;;  %v1450_v33 = vpop.f32.mrb[16].mxu0 }
 0xe3a   :  { %v1366_v36 = vpop.f32.mrb[33].mxu1  ;;  %v1452_v37 = vpop.f32.mrb[17].mxu0  ;;  %v1365_v41 = vadd.f32 %v1364_v31, %v1240_v29  ;;  %v1451_v42 = vadd.f32 %v1450_v33, %v1256_v1 }
 0xe3b   :  { %v1368_v23 = vpop.f32.mrb[34].mxu1  ;;  %v1454_v27 = vpop.f32.mrb[18].mxu0  ;;  %v1367_v45 = vadd.f32 %v1366_v36, %v1244_v26  ;;  %v3350_v18 = vadd.f32 %v1452_v37, %v1260_v34 }
 0xe3c   :  { %v1369_v49 = vadd.f32 %v1368_v23, %v1240_v29  ;;  %v1455_v43 = vadd.f32 %v1454_v27, %v1256_v1  ;;  %v1370_v38 = vpop.f32.mrb[35].mxu1  ;;  %v1456_v44 = vpop.f32.mrb[19].mxu0 }
 0xe3d   :  { %v1371_v40 = vadd.f32 %v1370_v38, %v1244_v26  ;;  %v3352_v46 = vadd.f32 %v1456_v44, %v1260_v34 }
 0xe3e   :  { %v1492_v47 = vpack.c.bf16 %v1369_v49, %v1365_v41  ;;  %v1608_v50 = vpack.c.bf16 %v1455_v43, %v1451_v42 }
 0xe3f   :  { %v1493_v21 = vpack.c.bf16 %v1371_v40, %v1367_v45  ;;  %v1673_v51 = vpack.c.bf16 %v3352_v46, %v3350_v18  ;;  %v2751_v18 = vld [vmem:[%s3543_s7 + $0x88] sm:$0xff]   ;;  %v2753_v46 = vld [vmem:[%s3543_s7 + $0x90] sm:$0xff]  }
 0xe41   :  { %v1407_v54 = vpop.f32.mrb[36].mxu1  ;;  %2582 = vmatpush3.bf16.xpose.msra.mxu1 %v1493_v21  ;;  %v2754_v21 = vld [vmem:[%s3543_s7 + $0xc8] sm:$0xff]  }
 0xe42   :  { %v1409_v58 = vpop.f32.mrb[37].mxu1  ;;  %2593 = vmatprep.subr.bf16.mxu1 %v2865_v6  ;;  %v1408_v60 = vadd.f32 %v1407_v54, %v1248_v52  ;;  %v2758_v54 = vld [vmem:[%s3543_s7 + $0xd8] sm:$0xff]  }
 0xe43   :  { %v1411_v59 = vpop.f32.mrb[38].mxu1  ;;  %v1410_v63 = vadd.f32 %v1409_v58, %v1252_v56 }
 0xe44   :  { %v1412_v61 = vadd.f32 %v1411_v59, %v1248_v52  ;;  %v1413_v62 = vpop.f32.mrb[39].mxu1  ;;  %v2756_v52 = vld [vmem:[%s3543_s7 + $0xd0] sm:$0xff]  }
 0xe45   :  { %v1414_v0 = vadd.f32 %v1413_v62, %v1252_v56  ;;  %v2760_v56 = vld [vmem:[%s3543_s7 + $0xe0] sm:$0xff]  }
 0xe46   :  { %v1558_v2 = vpack.c.bf16 %v1412_v61, %v1408_v60 }
 0xe47   :  { %v1607_v3 = vpack.c.bf16 %v1414_v0, %v1410_v63 }
 0xe48   :  { %2584 = vmatmul.mubr.bf16.vlgmr.msra.gmra.mrb[40].mxu1 %v1492_v47  ;;  %v1563_v4 = vsel %vm588_vm4, %v1558_v2, 0 }
 0xe49   :  { %2588 = vmatpush3.bf16.msra.mxu0 %v1563_v4  ;;  %2594 = vmatpush3.bf16.xpose.msra.mxu1 %v1608_v50  ;;  %v2752_v50 = vld [vmem:[%s3543_s7 + $0xc0] sm:$0xff]   ;;  %v1678_v4 = vsel %vm588_vm4, %v1673_v51, 0  ;;  %v2755_v51 = vld [vmem:[%s3543_s7 + $0x98] sm:$0xff]  }
 0xe4a   :  { %2595 = vmatprep.mubr.msk.bf16.mxu1 %vm2866_vm3, %v2865_v6  ;;  %2599 = vmatprep.subr.bf16.mxu0 %v2865_v6 }
 0xe4b   :  { %2605 = vmatprep.subr.bf16.mxu1 %v2865_v6 }
 0xe50   :  { %2596 = vmatmul.mubr.bf16.vlgmr.msra.gmra.mrb[44].mxu1 %v1607_v3 }
 0xe51   :  { %2621 = vmatprep.mubr.msk.bf16.mxu1 %vm2866_vm3, %v2865_v6  ;;  %2606 = vmatpush3.bf16.msra.mxu1 %v2752_v50 }
 0xe52   :  { %2607 = vmatprep.subr.bf16.mxu1 %v2865_v6 }
 0xe55   :  { %2608 = vmatpush3.bf16.msra.mxu1 %v2754_v21 }
 0xe56   :  { %2609 = vmatprep.subr.bf16.mxu1 %v2865_v6 }
 0xe59   :  { %2610 = vmatpush3.bf16.msra.mxu1 %v2756_v52 }
 0xe5a   :  { %2611 = vmatprep.subr.bf16.mxu1 %v2865_v6 }
 0xe5d   :  { %2612 = vmatpush3.bf16.msra.mxu1 %v2758_v54 }
 0xe5e   :  { %2613 = vmatprep.subr.bf16.mxu1 %v2865_v6 }
 0xe61   :  { %2614 = vmatpush3.bf16.msra.mxu1 %v2760_v56 }
 0xe62   :  { %2615 = vmatprep.subr.bf16.mxu1 %v2865_v6 }
 0xf1b   :  { %v1528_v7 = vpop.f32.mrb[40].mxu1 }
 0xf1c   :  { %v1529_v8 = vadd.f32 %v1528_v7, %v3118_v55  ;;  %v2585_v9 = vpop.f32.mrb[41].mxu1 }
 0xf1d   :  { %v1531_v10 = vpop.f32.mrb[42].mxu1 }
 0xf1e   :  { %v1532_v11 = vadd.f32 %v1531_v10, %v3123_v57  ;;  %v2586_v12 = vpop.f32.mrb[43].mxu1  ;;  %v1535_v13 = vsel %vm559_vm5, %v1529_v8, -inf }
 0xf1f   :  { %1536 = vmax.xlane.f32.xlu0 %v1535_v13  ;;  %v2757_v13 = vld [vmem:[%s3543_s7 + $0xa0] sm:$0xff]  }
 0xf20   :  { %v1538_v14 = vsel %vm563_vm6, %v1532_v11, -inf }
 0xf21   :  { %1539 = vmax.xlane.f32.xlu1 %v1538_v14  ;;  %v2759_v14 = vld [vmem:[%s3543_s7 + $0xa8] sm:$0xff]  }
 0xf23   :  { %v1643_v15 = vpop.f32.mrb[44].mxu1 }
 0xf24   :  { %v1644_v17 = vadd.f32 %v1643_v15, %v3118_v55  ;;  %v2597_v19 = vpop.f32.mrb[45].mxu1  ;;  %v2761_v15 = vld [vmem:[%s3543_s7 + $0xb0] sm:$0xff]  }
 0xf25   :  { %v1646_v22 = vpop.f32.mrb[46].mxu1  ;;  %v2763_v19 = vld [vmem:[%s3543_s7 + $0xb8] sm:$0xff]  }
 0xf26   :  { %v1647_v24 = vadd.f32 %v1646_v22, %v3123_v57  ;;  %v2598_v25 = vpop.f32.mrb[47].mxu1  ;;  %v1650_v28 = vsel %vm559_vm5, %v1644_v17, -inf  ;;  %v2764_v22 = vld [vmem:[%s3543_s7 + $0xf0] sm:$0xff]  }
 0xf27   :  { %1651 = vmax.xlane.f32.xlu0 %v1650_v28 }
 0xf28   :  { %v1653_v29 = vsel %vm563_vm6, %v1647_v24, -inf }
 0xf29   :  { %1654 = vmax.xlane.f32.xlu1 %v1653_v29 }
 0xfac   :  { %v1537_v1 = vpop.xlane.xlu0 %1536 }
 0xfad   :  { %v1541_v31 = vsub.f32 %v1529_v8, %v1537_v1 }
 0xfae   :  { %v1540_v33 = vpop.xlane.xlu1 %1539 }
 0xfaf   :  { %v1543_v26 = vmul.f32 1.442695, %v1541_v31  ;;  %v1542_v34 = vsub.f32 %v1532_v11, %v1540_v33  ;;  %v2750_v11 = vld [vmem:[%s3543_s7 + $0x80] sm:$0xff]  }
 0xfb1   :  { %2810 = vpow2.f32 %v1543_v26  ;;  %v1545_v36 = vmul.f32 1.442695, %v1542_v34 }
 0xfb3   :  { %2812 = vpow2.f32 %v1545_v36 }
 0xfb4   :  { %v1652_v55 = vpop.xlane.xlu0 %1651 }
 0xfb5   :  { %v1656_v37 = vsub.f32 %v1644_v17, %v1652_v55  ;;  %v2762_v17 = vld [vmem:[%s3543_s7 + $0xe8] sm:$0xff]  }
 0xfb6   :  { %v1655_v23 = vpop.xlane.xlu1 %1654  ;;  %2616 = vmatpush3.bf16.msra.mxu1 %v2762_v17 }
 0xfb7   :  { %v1658_v27 = vmul.f32 1.442695, %v1656_v37  ;;  %v1657_v57 = vsub.f32 %v1647_v24, %v1655_v23  ;;  %2617 = vmatprep.subr.bf16.mxu1 %v2865_v6  ;;  %v2765_v24 = vld [vmem:[%s3543_s7 + $0xf8] sm:$0xff]  }
 0xfb9   :  { %2814 = vpow2.f32 %v1658_v27  ;;  %v1660_v41 = vmul.f32 1.442695, %v1657_v57 }
 0xfba   :  { %2618 = vmatpush3.bf16.msra.mxu1 %v2764_v22 }
 0xfbb   :  { %v2811_v42 = vpop.eup %2810  ;;  %2816 = vpow2.f32 %v1660_v41  ;;  %2619 = vmatprep.subr.bf16.mxu1 %v2865_v6 }
 0xfbc   :  { %v1547_v49 = vsel %vm559_vm5, %v2811_v42, 0.0 }
 0xfbd   :  { %v2813_v43 = vpop.eup %2812  ;;  %1548 = vadd.xlane.f32.xlu0 %v1547_v49  ;;  %v1905_v49 = vrot.slane %v3319_v5, %v3087_v16 }
 0xfbe   :  { %v1550_v38 = vsel %vm563_vm6, %v2813_v43, 0.0  ;;  %2620 = vmatpush3.bf16.msra.mxu1 %v2765_v24  ;;  %v2770_v24 = vld [vmem:[%s3546_s10 + $0x30] sm:$0xff]  }
 0xfbf   :  { %1551 = vadd.xlane.f32.xlu1 %v1550_v38  ;;  %2645 = vmatprep.subr.bf16.mxu1 %v2865_v6 }
 0xfc3   :  { %v2815_v44 = vpop.eup %2814 }
 0xfc4   :  { %v1662_v45 = vsel %vm559_vm5, %v2815_v44, 0.0 }
 0xfc5   :  { %v2817_v40 = vpop.eup %2816  ;;  %1663 = vadd.xlane.f32.xlu0 %v1662_v45 }
 0xfc6   :  { %v1665_v47 = vsel %vm563_vm6, %v2817_v40, 0.0 }
 0xfc7   :  { %1666 = vadd.xlane.f32.xlu1 %v1665_v47 }
0x104a   :  { %v1549_v58 = vpop.xlane.xlu0 %1548 }
0x104b   :  { %2818 = vrcp.f32 %v1549_v58 }
0x104c   :  { %v1552_v59 = vpop.xlane.xlu1 %1551 }
0x104d   :  { %2820 = vrcp.f32 %v1552_v59 }
0x1052   :  { %v1664_v60 = vpop.xlane.xlu0 %1663 }
0x1053   :  { %2822 = vrcp.f32 %v1664_v60 }
0x1054   :  { %v1667_v61 = vpop.xlane.xlu1 %1666 }
0x1055   :  { %v2819_v62 = vpop.eup %2818  ;;  %2824 = vrcp.f32 %v1667_v61 }
0x1056   :  { %v1555_v0 = vmul.f32 %v2819_v62, %v2811_v42 }
0x1057   :  { %v2821_v63 = vpop.eup %2820 }
0x1058   :  { %v1556_v2 = vmul.f32 %v2821_v63, %v2813_v43 }
0x105a   :  { %v1557_v3 = vpack.c.bf16 %v1556_v2, %v1555_v0  ;;  %v2766_v0 = vld [vmem:[%s3544_s8 + $0x10] sm:$0xff]   ;;  %v2767_v2 = vld [vmem:[%s3544_s8 + $0x18] sm:$0xff]  }
0x105c   :  { %2590 = vmatmul.mubr.msk.bf16.vlgmr.msra.gmra.mrb[20].mxu0 %vm559_vm5, %v1557_v3 }
0x105d   :  { %v2823_v7 = vpop.eup %2822  ;;  %2600 = vmatpush3.bf16.msra.mxu0 %v1678_v4  ;;  %2601 = vmatprep.mubr.msk.bf16.mxu0 %vm2866_vm3, %v2865_v6 }
0x105e   :  { %2625 = vmatprep.subr.bf16.mxu0 %v2865_v6  ;;  %v1670_v9 = vmul.f32 %v2823_v7, %v2815_v44 }
0x105f   :  { %v2825_v8 = vpop.eup %2824 }
0x1060   :  { %v1671_v10 = vmul.f32 %v2825_v8, %v2817_v40 }
0x1062   :  { %v1672_v12 = vpack.c.bf16 %v1671_v10, %v1670_v9 }
0x1064   :  { %2602 = vmatmul.mubr.msk.bf16.vlgmr.msra.gmra.mrb[24].mxu0 %vm559_vm5, %v1672_v12 }
0x1065   :  { %2626 = vmatpush3.bf16.msra.mxu0 %v2750_v11  ;;  %2641 = vmatprep.mubr.msk.bf16.mxu0 %vm2866_vm3, %v2865_v6  ;;  %v1937_v11 = vrot.slane %v3319_v5, %v3090_v20  ;;  %v2768_v20 = vld [vmem:[%s3546_s10 + $0x20] sm:$0xff]  }
0x1066   :  { %2627 = vmatprep.subr.bf16.mxu0 %v2865_v6 }
0x1069   :  { %2628 = vmatpush3.bf16.msra.mxu0 %v2751_v18 }
0x106a   :  { %2629 = vmatprep.subr.bf16.mxu0 %v2865_v6 }
0x106d   :  { %2630 = vmatpush3.bf16.msra.mxu0 %v2753_v46 }
0x106e   :  { %2631 = vmatprep.subr.bf16.mxu0 %v2865_v6 }
0x1071   :  { %2632 = vmatpush3.bf16.msra.mxu0 %v2755_v51 }
0x1072   :  { %2633 = vmatprep.subr.bf16.mxu0 %v2865_v6 }
0x1075   :  { %2634 = vmatpush3.bf16.msra.mxu0 %v2757_v13 }
0x1076   :  { %2635 = vmatprep.subr.bf16.mxu0 %v2865_v6 }
0x1079   :  { %2636 = vmatpush3.bf16.msra.mxu0 %v2759_v14  ;;  %v1943_v14 = vrot.slane %v3319_v5, %v3096_v32  ;;  %v2769_v32 = vld [vmem:[%s3546_s10 + $0x28] sm:$0xff]  }
0x107a   :  { %2637 = vmatprep.subr.bf16.mxu0 %v2865_v6 }
0x107d   :  { %2638 = vmatpush3.bf16.msra.mxu0 %v2761_v15 }
0x107e   :  { %2639 = vmatprep.subr.bf16.mxu0 %v2865_v6 }
0x1081   :  { %2640 = vmatpush3.bf16.msra.mxu0 %v2763_v19 }
0x1082   :  { %2653 = vmatprep.subr.bf16.mxu0 %v2865_v6 }
0x112f   :  { %v1599_v25 = vpop.f32.mrb[20].mxu0 }
0x1130   :  { %v2591_v28 = vpop.f32.mrb[21].mxu0 }
0x1131   :  { %v1602_v29 = vpop.f32.mrb[22].mxu0  ;;  %v2405_v28 = vld [vmem:[%s3545_s9 + $0x1] ss:$0 sm:$0xff] }
0x1132   :  { %v1606_v1 = vpack.c.bf16 %v1602_v29, %v1599_v25  ;;  %v2592_v31 = vpop.f32.mrb[23].mxu0  ;;  %v2771_v25 = vld [vmem:[%s3546_s10 + $0x38] sm:$0xff]  }
0x1134   :  { %2642 = vmatmul.mubr.bf16.vlgmr.msra.gmra.mrb[28].mxu0 %v1606_v1 }
0x1135   :  { %2661 = vmatprep.mubr.msk.bf16.mxu0 %vm2866_vm3, %v2865_v6  ;;  %2654 = vmatpush3.bf16.msra.mxu0 %v2768_v20 }
0x1136   :  { %2655 = vmatprep.subr.bf16.mxu0 %v2865_v6 }
0x1137   :  { %v1714_v33 = vpop.f32.mrb[24].mxu0 }
0x1138   :  { %v2603_v26 = vpop.f32.mrb[25].mxu0 }
0x1139   :  { %v1717_v34 = vpop.f32.mrb[26].mxu0  ;;  %2656 = vmatpush3.bf16.msra.mxu0 %v2769_v32 }
0x113a   :  { %v1721_v36 = vpack.c.bf16 %v1717_v34, %v1714_v33  ;;  %v2604_v55 = vpop.f32.mrb[27].mxu0  ;;  %2657 = vmatprep.subr.bf16.mxu0 %v2865_v6 }
0x113c   :  { %2622 = vmatmul.mubr.bf16.vlgmr.msra.gmra.mrb[48].mxu1 %v1721_v36 }
0x113d   :  { %2649 = vmatprep.mubr.msk.bf16.mxu1 %vm2866_vm3, %v2865_v6  ;;  %2646 = vmatpush3.bf16.msra.mxu1 %v2766_v0 }
0x113e   :  { %2647 = vmatprep.subr.bf16.mxu1 %v2865_v6  ;;  %2658 = vmatpush3.bf16.msra.mxu0 %v2770_v24 }
0x113f   :  { %2659 = vmatprep.subr.bf16.mxu0 %v2865_v6 }
0x1141   :  { %2648 = vmatpush3.bf16.msra.mxu1 %v2767_v2 }
0x1142   :  { %2665 = vmatprep.subr.bf16.mxu1 %v2865_v6  ;;  %2660 = vmatpush3.bf16.msra.mxu0 %v2771_v25 }
0x1207   :  { %v1893_v37 = vpop.f32.mrb[28].mxu0 }
0x1208   :  { %v2643_v23 = vpop.f32.mrb[29].mxu0 }
0x1209   :  { %v1896_v27 = vpop.f32.mrb[30].mxu0 }
0x120a   :  { %v2644_v57 = vpop.f32.mrb[31].mxu0 }
0x120f   :  { %v1804_v41 = vpop.f32.mrb[48].mxu1 }
0x1210   :  { %v1894_v42 = vadd.f32 %v1893_v37, %v1804_v41  ;;  %v2623_v43 = vpop.f32.mrb[49].mxu1 }
0x1211   :  { %v1807_v38 = vpop.f32.mrb[50].mxu1 }
0x1212   :  { %v1900_v44 = vadd.f32 %v1894_v42, %v3275_v30  ;;  %v1897_v45 = vadd.f32 %v1896_v27, %v1807_v38  ;;  %v2624_v40 = vpop.f32.mrb[51].mxu1 }
0x1214   :  { %v3460_v47 = vadd.f32 %v1905_v49, %v1900_v44  ;;  %v1901_v50 = vadd.f32 %v1897_v45, %v3278_v39 }
0x1216   :  { %v1908_v21 = vsel %vm206_vm1, %v3460_v47, 0.0  ;;  %v1907_v52 = vadd.f32 %v1905_v49, %v1901_v50 }
0x1217   :  { %1909 = vadd.xlane.f32.xlu0 %v1908_v21 }
0x1218   :  { %v1911_v54 = vsel %vm210_vm2, %v1907_v52, 0.0 }
0x1219   :  { %1912 = vadd.xlane.f32.xlu1 %v1911_v54 }
0x12a4   :  { %v1910_v56 = vpop.xlane.xlu0 %1909 }
0x12a5   :  { %v1914_v16 = vmul.f32 0.03125, %v1910_v56 }
0x12a6   :  { %v1913_v58 = vpop.xlane.xlu1 %1912 }
0x12a7   :  { %v1916_v59 = vsub.f32 %v3460_v47, %v1914_v16  ;;  %v1915_v30 = vmul.f32 0.03125, %v1913_v58 }
0x12a9   :  { %v1917_v60 = vsub.f32 %v1907_v52, %v1915_v30  ;;  %v1918_v61 = vmul.f32 %v1916_v59, %v1916_v59 }
0x12ab   :  { %v1920_v62 = vsel %vm206_vm1, %v1918_v61, 0.0  ;;  %v1919_v63 = vmul.f32 %v1917_v60, %v1917_v60 }
0x12ac   :  { %1921 = vadd.xlane.f32.xlu0 %v1920_v62 }
0x12ad   :  { %v1923_v39 = vsel %vm210_vm2, %v1919_v63, 0.0 }
0x12ae   :  { %1924 = vadd.xlane.f32.xlu1 %v1923_v39 }
0x1339   :  { %v1922_v3 = vpop.xlane.xlu0 %1921 }
0x133a   :  { %v1926_v4 = vmul.f32 0.03125, %v1922_v3 }
0x133b   :  { %v1925_v7 = vpop.xlane.xlu1 %1924 }
0x133c   :  { %v1928_v8 = vadd.f32 1e-12, %v1926_v4  ;;  %v1927_v9 = vmul.f32 0.03125, %v1925_v7 }
0x133e   :  { %2826 = vrsqrt.f32 %v1928_v8  ;;  %v1929_v10 = vadd.f32 1e-12, %v1927_v9 }
0x1340   :  { %2828 = vrsqrt.f32 %v1929_v10 }
0x1348   :  { %v2827_v12 = vpop.eup %2826 }
0x1349   :  { %v1932_v18 = vmul.f32 %v2827_v12, %v1916_v59 }
0x134a   :  { %v2829_v46 = vpop.eup %2828 }
0x134b   :  { %v1938_v51 = vmul.f32 %v1937_v11, %v1932_v18  ;;  %v1933_v13 = vmul.f32 %v2829_v46, %v1917_v60 }
0x134d   :  { %v1939_v15 = vmul.f32 %v1937_v11, %v1933_v13  ;;  %v1944_v17 = vadd.f32 %v1943_v14, %v1938_v51 }
0x134f   :  { %v1945_v19 = vadd.f32 %v1943_v14, %v1939_v15 }
0x1351   :  { %v1951_v22 = vpack.c.bf16 %v1945_v19, %v1944_v17 }
0x1353   :  { %2650 = vmatmul.mubr.msk.bf16.vlgmr.msra.gmra.mrb[52].mxu1 %vm206_vm1, %v1951_v22 }
0x1354   :  { %2669 = vmatprep.mubr.msk.bf16.mxu1 %vm2866_vm3, %v2865_v6 }
0x1426   :  { %v2009_v29 = vpop.f32.mrb[52].mxu1 }
0x1427   :  { %v2010_v1 = vadd.f32 %v2405_v28, %v2009_v29  ;;  %v2651_v31 = vpop.f32.mrb[53].mxu1 }
0x1428   :  { %v2012_v33 = vpop.f32.mrb[54].mxu1 }
0x1429   :  { %v2018_v26 = vmul.f32 0.70710677, %v2010_v1  ;;  %v2013_v34 = vadd.f32 %v2405_v28, %v2012_v33  ;;  %v2652_v36 = vpop.f32.mrb[55].mxu1  ;;  %v2016_v19 = vmul.f32 0.5, %v2010_v1  ;;  %v2151_v28 = vrot.slane %v3319_v5, %v3103_v35  ;;  %v2772_v35 = vld [vmem:[%s3548_s12] sm:$0xff]   ;;  %v2773_v5 = vld [vmem:[%s3548_s12 + $0x8] sm:$0xff]  }
0x142a   :  { %2666 = vmatpush3.bf16.msra.mxu1 %v2772_v35 }
0x142b   :  { %v2020_v55 = vand.u32 2147483647, %v2018_v26  ;;  %v2019_v37 = vmul.f32 0.70710677, %v2013_v34  ;;  %vm2060_vm9 = vcmp.ge.f32.partialorder %v2018_v26, 0.0  ;;  %v2017_v22 = vmul.f32 0.5, %v2013_v34  ;;  %2667 = vmatprep.subr.bf16.mxu1 %v2865_v6 }
0x142d   :  { %v2022_v23 = vmul.f32 0.3275911, %v2020_v55  ;;  %v2021_v27 = vand.u32 2147483647, %v2019_v37  ;;  %v2048_v49 = vsub.f32 0.0, %v2020_v55  ;;  %vm2061_vm10 = vcmp.ge.f32.partialorder %v2019_v37, 0.0 }
0x142e   :  { %2668 = vmatpush3.bf16.msra.mxu1 %v2773_v5 }
0x142f   :  { %v2024_v57 = vadd.f32 1.0, %v2022_v23  ;;  %v2023_v41 = vmul.f32 0.3275911, %v2021_v27  ;;  %v2049_v43 = vsub.f32 0.0, %v2021_v27  ;;  %v2050_v44 = vmul.f32 %v2048_v49, %v2020_v55 }
0x1431   :  { %2830 = vrcp.f32 %v2024_v57  ;;  %v2025_v42 = vadd.f32 1.0, %v2023_v41  ;;  %v2051_v21 = vmul.f32 %v2049_v43, %v2021_v27  ;;  %v2052_v52 = vmul.f32 1.442695, %v2050_v44 }
0x1433   :  { %2832 = vrcp.f32 %v2025_v42  ;;  %v2054_v59 = vmul.f32 1.442695, %v2051_v21 }
0x1434   :  { %2834 = vpow2.f32 %v2052_v52 }
0x1435   :  { %2836 = vpow2.f32 %v2054_v59 }
0x143b   :  { %v2831_v38 = vpop.eup %2830 }
0x143c   :  { %v2030_v45 = vmul.f32 1.0614054, %v2831_v38 }
0x143d   :  { %v2833_v40 = vpop.eup %2832 }
0x143e   :  { %v2032_v50 = vadd.f32 -1.4531521, %v2030_v45  ;;  %v2031_v54 = vmul.f32 1.0614054, %v2833_v40  ;;  %v2835_v7 = vpop.eup %2834 }
0x143f   :  { %v2837_v11 = vpop.eup %2836 }
0x1440   :  { %v2034_v56 = vmul.f32 %v2831_v38, %v2032_v50  ;;  %v2033_v16 = vadd.f32 -1.4531521, %v2031_v54  ;;  %v2422_v54 = vld [vmem:[%s3549_s13] ss:$0 sm:$0xff] }
0x1442   :  { %v2036_v58 = vadd.f32 1.4214138, %v2034_v56  ;;  %v2035_v30 = vmul.f32 %v2833_v40, %v2033_v16 }
0x1444   :  { %v2038_v60 = vmul.f32 %v2831_v38, %v2036_v58  ;;  %v2037_v61 = vadd.f32 1.4214138, %v2035_v30 }
0x1446   :  { %v2040_v62 = vadd.f32 -0.28449672, %v2038_v60  ;;  %v2039_v63 = vmul.f32 %v2833_v40, %v2037_v61 }
0x1448   :  { %v2042_v39 = vmul.f32 %v2831_v38, %v2040_v62  ;;  %v2041_v0 = vadd.f32 -0.28449672, %v2039_v63 }
0x144a   :  { %v2044_v2 = vadd.f32 0.2548296, %v2042_v39  ;;  %v2043_v3 = vmul.f32 %v2833_v40, %v2041_v0 }
0x144c   :  { %v2046_v4 = vmul.f32 %v2831_v38, %v2044_v2  ;;  %v2045_v8 = vadd.f32 0.2548296, %v2043_v3  ;;  %v2158_v38 = vld [vmem:[%s3547_s11] sm:$0x3]  ;;  %s2840_s11 = scalar_lea.vmem %s2257_s18, 32 }
0x144d   :  { %v2175_v44 = vrot.slane %v2158_v38, %v3035_v48  ;;  %v2180_v50 = vrot.slane %v2158_v38, %v3045_v53  ;;  %p2841_p0 = scmp.ne.s32.totalorder %s2257_s18, %s2840_s11  ;;  %p2846_p2 = scmp.lt.s32.totalorder %s2840_s11, %s2840_s11 }
0x144e   :  { %v2056_v9 = vmul.f32 %v2835_v7, %v2046_v4  ;;  %v2047_v10 = vmul.f32 %v2833_v40, %v2045_v8 }
0x144f   :  { %p2847_p3 = por %p2846_p2, %p2845_p1 }
0x1450   :  { %v2058_v12 = vsub.f32 1.0, %v2056_v9  ;;  %v2057_v18 = vmul.f32 %v2837_v11, %v2047_v10 }
0x1451   :  { %p2848_p4 = pnand %p2847_p3, %p2841_p0 }
0x1452   :  { %v2062_v46 = vsub.f32 0.0, %v2058_v12  ;;  %v2059_v51 = vsub.f32 1.0, %v2057_v18 }
0x1454   :  { %v2064_v13 = vsel %vm2060_vm9, %v2058_v12, %v2062_v46  ;;  %v2063_v14 = vsub.f32 0.0, %v2059_v51 }
0x1455   :  { %v2066_v15 = vadd.f32 1.0, %v2064_v13 }
0x1456   :  { %v2065_v17 = vsel %vm2061_vm10, %v2059_v51, %v2063_v14 }
0x1457   :  { %v2067_v20 = vadd.f32 1.0, %v2065_v17  ;;  %v2068_v32 = vmul.f32 %v2066_v15, %v2016_v19 }
0x1459   :  { %v2069_v24 = vmul.f32 %v2067_v20, %v2017_v22 }
0x145b   :  { %v2079_v25 = vpack.c.bf16 %v2069_v24, %v2068_v32 }
0x145d   :  { %2662 = vmatmul.mubr.msk.bf16.vlgmr.msra.gmra.mrb[32].mxu0 %vm160_vm0, %v2079_v25 }
0x1530   :  { %v2141_v29 = vpop.f32.mrb[32].mxu0 }
0x1531   :  { %v2147_v31 = vadd.f32 %v2141_v29, %v3460_v47  ;;  %v2663_v33 = vpop.f32.mrb[33].mxu0 }
0x1532   :  { %v2144_v26 = vpop.f32.mrb[34].mxu0 }
0x1533   :  { %v2152_v36 = vadd.f32 %v2151_v28, %v2147_v31  ;;  %v2664_v55 = vpop.f32.mrb[35].mxu0 }
0x1535   :  { %v2154_v37 = vrot.slane %v2152_v36, 4 }
0x1537   :  { %v2157_v1 = vsel %vm2156_vm11, %v2152_v36, %v2154_v37 }
0x1538   :  { %v2159_v34 = vsel %vm210_vm2, %v2157_v1, 0.0 }
0x1539   :  { %2160 = vadd.xlane.f32.xlu0 %v2159_v34 }
0x15c6   :  { %v2161_v23 = vpop.xlane.xlu0 %2160 }
0x15c7   :  { %v2162_v27 = vmul.f32 0.03125, %v2161_v23 }
0x15c9   :  { %v2163_v57 = vsub.f32 %v2157_v1, %v2162_v27 }
0x15cb   :  { %v2164_v41 = vmul.f32 %v2163_v57, %v2163_v57 }
0x15cd   :  { %v2165_v42 = vsel %vm210_vm2, %v2164_v41, 0.0 }
0x15ce   :  { %2166 = vadd.xlane.f32.xlu1 %v2165_v42 }
0x165b   :  { %v2167_v47 = vpop.xlane.xlu1 %2166 }
0x165c   :  { %v2168_v49 = vmul.f32 0.03125, %v2167_v47 }
0x165e   :  { %v2169_v43 = vadd.f32 1e-12, %v2168_v49 }
0x1660   :  { %2838 = vrsqrt.f32 %v2169_v43 }
0x166a   :  { %v2839_v45 = vpop.eup %2838 }
0x166b   :  { %v2171_v40 = vmul.f32 %v2839_v45, %v2163_v57 }
0x166d   :  { %v2176_v6 = vmul.f32 %v2175_v44, %v2171_v40 }
0x166f   :  { %v2181_v21 = vadd.f32 %v2180_v50, %v2176_v6 }
0x1671   :  { %v2186_v52 = vpack.c.bf16 %v2181_v21, %v2181_v21 }
0x1673   :  { %2670 = vmatmul.mubr.msk.bf16.vlgmr.msra.gmra.mrb[56].mxu1 %vm206_vm1, %v2186_v52 }
0x1746   :  { %v2243_v56 = vpop.f32.mrb[56].mxu1 }
0x1747   :  { %v2244_v16 = vadd.f32 %v2422_v54, %v2243_v56  ;;  %v2671_v58 = vpop.f32.mrb[57].mxu1 }
0x1748   :  { %v2246_v48 = vpop.f32.mrb[58].mxu1 }
0x1749   :  { %2249 = vst [vmem:[#allocation2] sm:$0x3] %v2244_v16  ;;  %v2672_v59 = vpop.f32.mrb[59].mxu1 }
0x174a   :  { %2851 = shalt.err (!%p2848_p4)
}
0x174b   :  { %s2852_s13 = scalar_lea.hbm %s3550_s14, 32 }
0x174c   :  { %p2853_p5 = scmp.ne.s32.totalorder %s3550_s14, %s2852_s13  ;;  %p2856_p6 = scmp.lt.u32.totalorder %s2852_s13, %s3550_s14 }
0x174e   :  { %p2858_p7 = pnand %p2856_p6, %p2853_p5 }
0x1750   :  { %2861 = shalt.err (!%p2858_p7)
}
0x1751   :  { %2259 = dma.vmem_to_hbm [thread:$0]  %s2257_s18, 32, %s3550_s14, [#allocation3]  }
0x1752   :  { %2862 = dma.done.wait [#allocation3], 32  }
0x1753   :  { %2863 = vsyncadd [#allocation3], 4294967264 }
0x1754   :  { %2263 = vsyncpa [#allocation3], 1 }

</bundles_post_ra>
